<compile_context>
chip_gen: v7x
topology: tpu7x:2x2x1
jax: 0.10.0
libtpu: 0.0.40
codegen_flags: <defaults>
</compile_context>

<pallas_src>
import functools
import math

import jax
import jax.numpy as jnp
from jax import lax
from jax.experimental import pallas as pl
from jax.experimental.pallas import tpu as pltpu


def _round_up(x, m):
    return (x + m - 1) // m * m


def _basic_conv2d_kernel(x_ref, w_ref, bias_ref, o_ref, *, TH, Wo, KH, KW):
    """One (batch element, output-row tile) per grid step.

    x_ref:    (1, Hp, Wp, Cin)     bf16 padded NHWC image (resident across row tiles)
    w_ref:    (KH*KW, Cin, Cout)   bf16 per-tap weights, BN scale already folded in
    bias_ref: (1, Cout)            f32 folded BN bias = beta - mean * gamma/sqrt(var+eps)
    o_ref:    (1, TH*Wo, Cout)     f32 output row tile
    """
    Cin = x_ref.shape[-1]
    Cout = w_ref.shape[-1]
    TM = TH * Wo

    r = pl.program_id(1)
    row0 = pl.multiple_of(r * TH, TH)

    # Accumulate-shift convolution: KH*KW small matmuls into an f32 accumulator.
    # No patch scratch, no masked/misaligned stores.
    acc = jnp.zeros((TM, Cout), jnp.float32)
    for kh in range(KH):
        # Slice along H (a major dim) -> contiguous, no relayout.
        xh = x_ref[0, pl.ds(row0 + kh, TH), :, :]              # (TH, Wp, Cin)
        for kw in range(KW):
            # kw shift along W (sublane axis): cheap in-VMEM sublane-offset load.
            xs = xh[:, kw:kw + Wo, :].reshape(TM, Cin)         # (TM, Cin) bf16
            # TODO(synk): when Wo % 8 != 0 this reshape crosses (8,128) tiles and
            #             materializes a relayout copy; keep Wo a multiple of 8
            #             at the model level or pad W if that bites.
            acc = acc + jnp.dot(xs, w_ref[kh * KW + kw],
                                preferred_element_type=jnp.float32)

    # Fused BatchNorm (eval mode, scale folded into weights) + ReLU; f32 epilogue.
    y = acc + bias_ref[...]
    o_ref[0] = jnp.maximum(y, 0.0).astype(o_ref.dtype)


def basic_conv2d(x_nchw, w_oihw, gamma, beta, running_mean, running_var,
                 *, stride=1, padding=1, eps=1e-3):
    """Pallas implementation of BasicConv2d.forward (stride=1, eval-mode BN)."""
    if stride != 1:
        raise NotImplementedError("BasicConv2d Pallas kernel supports stride=1 only")

    N, Cin, H, W = x_nchw.shape
    Cout, Cin_w, KH, KW = w_oihw.shape
    assert Cin == Cin_w

    # ---- glue (plain JAX): layout + pad + bf16 cast -------------------------
    x_nhwc = jnp.transpose(x_nchw, (0, 2, 3, 1)).astype(jnp.bfloat16)
    Hp, Wp = H + 2 * padding, W + 2 * padding
    Ho, Wo = Hp - KH + 1, Wp - KW + 1       # stride 1

    # ---- row tiling: TM = TH*Wo rows per step, always a multiple of 8 -------
    target_m = 256                           # ~2 MXU passes worth of rows
    g = 8 // math.gcd(Wo, 8)                 # smallest g with (g*Wo) % 8 == 0
    TH = max(1, target_m // Wo)
    TH = _round_up(TH, g)
    TH = min(TH, _round_up(Ho, g))
    Ho_p = _round_up(Ho, TH)                 # pad rows instead of TH=Ho fallback
    R = Ho_p // TH
    TM = TH * Wo

    # Pad: conv halo + any extra zero rows needed by the padded row grid.
    extra_h = Ho_p - Ho
    x_pad = jnp.pad(x_nhwc, ((0, 0),
                             (padding, padding + extra_h),
                             (padding, padding),
                             (0, 0)))
    Hp_p = Ho_p + KH - 1

    # ---- weights: fold BN scale (f32) then cast bf16; per-tap (Cin, Cout) ---
    inv_std = 1.0 / jnp.sqrt(running_var + eps)
    scale = (gamma * inv_std).astype(jnp.float32)                      # (Cout,)
    bias = (beta - running_mean * scale).astype(jnp.float32).reshape(1, Cout)

    w_folded = w_oihw.astype(jnp.float32) * scale[:, None, None, None]  # OIHW
    w_taps = jnp.transpose(w_folded, (2, 3, 1, 0))                      # (KH,KW,Cin,Cout)
    w_taps = w_taps.reshape(KH * KW, Cin, Cout).astype(jnp.bfloat16)

    kernel = functools.partial(_basic_conv2d_kernel, TH=TH, Wo=Wo, KH=KH, KW=KW)

    # Batch axis parallel (keeps image/weights resident per core on v7x);
    # row-tile axis arbitrary when there are >= 2 images to split instead.
    dim_sem = ("parallel", "arbitrary") if N >= 2 else ("parallel", "parallel")

    out_flat = pl.pallas_call(
        kernel,
        out_shape=jax.ShapeDtypeStruct((N, Ho_p * Wo, Cout), jnp.float32),
        grid_spec=pltpu.PrefetchScalarGridSpec(
            num_scalar_prefetch=0,
            grid=(N, R),
            in_specs=[
                # Whole padded image kept resident across the row-tile axis
                # (index_map ignores r) -> one input DMA per batch element.
                pl.BlockSpec((1, Hp_p, Wp, Cin), lambda n, r: (n, 0, 0, 0)),
                pl.BlockSpec((KH * KW, Cin, Cout), lambda n, r: (0, 0, 0)),
                pl.BlockSpec((1, Cout), lambda n, r: (0, 0)),
            ],
            out_specs=pl.BlockSpec((1, TM, Cout), lambda n, r: (n, r, 0)),
        ),
        compiler_params=pltpu.CompilerParams(
            dimension_semantics=dim_sem,
            vmem_limit_bytes=48 * 1024 * 1024,
        ),
    )(x_pad, w_taps, bias)

    # ---- glue: drop padded rows, back to PyTorch NCHW -----------------------
    out_nhwc = out_flat.reshape(N, Ho_p, Wo, Cout)[:, :Ho]
    return jnp.transpose(out_nhwc, (0, 3, 1, 2))


def _reference(x, w_folded, bias, *, padding=1):
    """Conv with BN-scale-folded weights + bias + ReLU (matches kernel math)."""
    y = lax.conv_general_dilated(
        x, w_folded, window_strides=(1, 1),
        padding=((padding, padding), (padding, padding)),
        dimension_numbers=("NCHW", "OIHW", "NCHW"),
        preferred_element_type=jnp.float32,
        precision=lax.Precision.HIGHEST)
    return jnp.maximum(y + bias[None, :, None, None], 0.0)


if __name__ == "__main__":
    # BasicConv2d(in_channels=4, out_channels=8, kernel_size=3, padding=1)
    N, Cin, H, W = 2, 4, 16, 16
    Cout, KH, KW = 8, 3, 3
    eps = 1e-3

    key = jax.random.PRNGKey(0)
    k_x, k_w, k_g, k_b, k_m, k_v = jax.random.split(key, 6)

    x = jax.random.normal(k_x, (N, Cin, H, W), jnp.float32)
    conv_w = 0.1 * jax.random.normal(k_w, (Cout, Cin, KH, KW), jnp.float32)
    gamma = 1.0 + 0.1 * jax.random.normal(k_g, (Cout,), jnp.float32)
    beta = 0.1 * jax.random.normal(k_b, (Cout,), jnp.float32)
    running_mean = 0.1 * jax.random.normal(k_m, (Cout,), jnp.float32)
    running_var = jax.random.uniform(k_v, (Cout,), jnp.float32, 0.5, 1.5)

    out = basic_conv2d(x, conv_w, gamma, beta, running_mean, running_var,
                       stride=1, padding=1, eps=eps)
    out = jax.block_until_ready(out)

    # Reference on bf16-quantized x and (scale-folded) weights, exactly as the
    # kernel feeds the MXU, with f32 accumulation -> tight tolerance.
    inv_std = 1.0 / jnp.sqrt(running_var + eps)
    scale = gamma * inv_std
    bias = beta - running_mean * scale
    w_folded = conv_w * scale[:, None, None, None]
    x_q = x.astype(jnp.bfloat16).astype(jnp.float32)
    w_q = w_folded.astype(jnp.bfloat16).astype(jnp.float32)
    ref = _reference(x_q, w_q, bias, padding=1)

    assert out.shape == (N, Cout, H, W)
    assert jnp.allclose(out, ref, atol=2e-4, rtol=2e-4), "mismatch vs JAX reference"

    print("KERNEL_OK")
</pallas_src>

<mosaic_0001>
module attributes {stable_mosaic.version = 11 : i64} {
  func.func @_basic_conv2d_kernel(%arg0: i32, %arg1: i32, %arg2: memref<1x18x18x4xbf16, #tpu.memory_space<vmem>>, %arg3: memref<9x4x8xbf16, #tpu.memory_space<vmem>>, %arg4: memref<1x8xf32, #tpu.memory_space<vmem>>, %arg5: memref<1x256x8xf32, #tpu.memory_space<vmem>>) attributes {dimension_semantics = [#tpu.dimension_semantics<parallel>, #tpu.dimension_semantics<arbitrary>], iteration_bounds = array<i64: 2, 1>, scalar_prefetch = 0 : i64, scratch_operands = 0 : i64, tpu.core_type = #tpu.core_type<tc>, window_params = [{transform_indices = @transform_0, window_bounds = array<i64: 1, 18, 18, 4>}, {pipeline_mode = #tpu.pipeline_mode<synchronous>, transform_indices = @transform_1, window_bounds = array<i64: 9, 4, 8>}, {pipeline_mode = #tpu.pipeline_mode<synchronous>, transform_indices = @transform_2, window_bounds = array<i64: 1, 8>}, {transform_indices = @transform_3, window_bounds = array<i64: 1, 256, 8>}]} {
    %c16_i32 = arith.constant 16 : i32
    %0 = arith.muli %arg1, %c16_i32 : i32
    %1 = tpu.assume_multiple %0, 16 : i32
    %cst = arith.constant 0.000000e+00 : f32
    %2 = vector.broadcast %cst : f32 to vector<256x8xf32>
    %c0_i32 = arith.constant 0 : i32
    %3 = arith.addi %1, %c0_i32 : i32
    %c0 = arith.constant 0 : index
    %4 = arith.index_cast %3 : i32 to index
    %c0_0 = arith.constant 0 : index
    %c0_1 = arith.constant 0 : index
    %5 = vector.load %arg2[%c0, %4, %c0_0, %c0_1] : memref<1x18x18x4xbf16, #tpu.memory_space<vmem>>, vector<1x16x18x4xbf16>
    %6 = vector.shape_cast %5 : vector<1x16x18x4xbf16> to vector<16x18x4xbf16>
    %7 = vector.extract_strided_slice %6 {offsets = [0, 0, 0], sizes = [16, 16, 4], strides = [1, 1, 1]} : vector<16x18x4xbf16> to vector<16x16x4xbf16>
    %8 = vector.shape_cast %7 : vector<16x16x4xbf16> to vector<256x4xbf16>
    %c0_2 = arith.constant 0 : index
    %c0_3 = arith.constant 0 : index
    %c0_4 = arith.constant 0 : index
    %9 = vector.load %arg3[%c0_2, %c0_3, %c0_4] : memref<9x4x8xbf16, #tpu.memory_space<vmem>>, vector<1x4x8xbf16>
    %10 = vector.shape_cast %9 : vector<1x4x8xbf16> to vector<4x8xbf16>
    %cst_5 = arith.constant dense<0.000000e+00> : vector<256x8xf32>
    %11 = tpu.matmul %8, %10, %cst_5 {dimension_numbers = #tpu.dot_dimension_numbers<[1], [0], [0], [1], [0, 0, 1, 1], [], []>} : vector<256x4xbf16>, vector<4x8xbf16>, vector<256x8xf32> -> vector<256x8xf32>
    %12 = arith.addf %2, %11 : vector<256x8xf32>
    %13 = vector.extract_strided_slice %6 {offsets = [0, 1, 0], sizes = [16, 16, 4], strides = [1, 1, 1]} : vector<16x18x4xbf16> to vector<16x16x4xbf16>
    %14 = vector.shape_cast %13 : vector<16x16x4xbf16> to vector<256x4xbf16>
    %c1 = arith.constant 1 : index
    %c0_6 = arith.constant 0 : index
    %c0_7 = arith.constant 0 : index
    %15 = vector.load %arg3[%c1, %c0_6, %c0_7] : memref<9x4x8xbf16, #tpu.memory_space<vmem>>, vector<1x4x8xbf16>
    %16 = vector.shape_cast %15 : vector<1x4x8xbf16> to vector<4x8xbf16>
    %cst_8 = arith.constant dense<0.000000e+00> : vector<256x8xf32>
    %17 = tpu.matmul %14, %16, %cst_8 {dimension_numbers = #tpu.dot_dimension_numbers<[1], [0], [0], [1], [0, 0, 1, 1], [], []>} : vector<256x4xbf16>, vector<4x8xbf16>, vector<256x8xf32> -> vector<256x8xf32>
    %18 = arith.addf %12, %17 : vector<256x8xf32>
    %19 = vector.extract_strided_slice %6 {offsets = [0, 2, 0], sizes = [16, 16, 4], strides = [1, 1, 1]} : vector<16x18x4xbf16> to vector<16x16x4xbf16>
    %20 = vector.shape_cast %19 : vector<16x16x4xbf16> to vector<256x4xbf16>
    %c2 = arith.constant 2 : index
    %c0_9 = arith.constant 0 : index
    %c0_10 = arith.constant 0 : index
    %21 = vector.load %arg3[%c2, %c0_9, %c0_10] : memref<9x4x8xbf16, #tpu.memory_space<vmem>>, vector<1x4x8xbf16>
    %22 = vector.shape_cast %21 : vector<1x4x8xbf16> to vector<4x8xbf16>
    %cst_11 = arith.constant dense<0.000000e+00> : vector<256x8xf32>
    %23 = tpu.matmul %20, %22, %cst_11 {dimension_numbers = #tpu.dot_dimension_numbers<[1], [0], [0], [1], [0, 0, 1, 1], [], []>} : vector<256x4xbf16>, vector<4x8xbf16>, vector<256x8xf32> -> vector<256x8xf32>
    %24 = arith.addf %18, %23 : vector<256x8xf32>
    %c1_i32 = arith.constant 1 : i32
    %25 = arith.addi %1, %c1_i32 : i32
    %c0_12 = arith.constant 0 : index
    %26 = arith.index_cast %25 : i32 to index
    %c0_13 = arith.constant 0 : index
    %c0_14 = arith.constant 0 : index
    %27 = vector.load %arg2[%c0_12, %26, %c0_13, %c0_14] : memref<1x18x18x4xbf16, #tpu.memory_space<vmem>>, vector<1x16x18x4xbf16>
    %28 = vector.shape_cast %27 : vector<1x16x18x4xbf16> to vector<16x18x4xbf16>
    %29 = vector.extract_strided_slice %28 {offsets = [0, 0, 0], sizes = [16, 16, 4], strides = [1, 1, 1]} : vector<16x18x4xbf16> to vector<16x16x4xbf16>
    %30 = vector.shape_cast %29 : vector<16x16x4xbf16> to vector<256x4xbf16>
    %c3 = arith.constant 3 : index
    %c0_15 = arith.constant 0 : index
    %c0_16 = arith.constant 0 : index
    %31 = vector.load %arg3[%c3, %c0_15, %c0_16] : memref<9x4x8xbf16, #tpu.memory_space<vmem>>, vector<1x4x8xbf16>
    %32 = vector.shape_cast %31 : vector<1x4x8xbf16> to vector<4x8xbf16>
    %cst_17 = arith.constant dense<0.000000e+00> : vector<256x8xf32>
    %33 = tpu.matmul %30, %32, %cst_17 {dimension_numbers = #tpu.dot_dimension_numbers<[1], [0], [0], [1], [0, 0, 1, 1], [], []>} : vector<256x4xbf16>, vector<4x8xbf16>, vector<256x8xf32> -> vector<256x8xf32>
    %34 = arith.addf %24, %33 : vector<256x8xf32>
    %35 = vector.extract_strided_slice %28 {offsets = [0, 1, 0], sizes = [16, 16, 4], strides = [1, 1, 1]} : vector<16x18x4xbf16> to vector<16x16x4xbf16>
    %36 = vector.shape_cast %35 : vector<16x16x4xbf16> to vector<256x4xbf16>
    %c4 = arith.constant 4 : index
    %c0_18 = arith.constant 0 : index
    %c0_19 = arith.constant 0 : index
    %37 = vector.load %arg3[%c4, %c0_18, %c0_19] : memref<9x4x8xbf16, #tpu.memory_space<vmem>>, vector<1x4x8xbf16>
    %38 = vector.shape_cast %37 : vector<1x4x8xbf16> to vector<4x8xbf16>
    %cst_20 = arith.constant dense<0.000000e+00> : vector<256x8xf32>
    %39 = tpu.matmul %36, %38, %cst_20 {dimension_numbers = #tpu.dot_dimension_numbers<[1], [0], [0], [1], [0, 0, 1, 1], [], []>} : vector<256x4xbf16>, vector<4x8xbf16>, vector<256x8xf32> -> vector<256x8xf32>
    %40 = arith.addf %34, %39 : vector<256x8xf32>
    %41 = vector.extract_strided_slice %28 {offsets = [0, 2, 0], sizes = [16, 16, 4], strides = [1, 1, 1]} : vector<16x18x4xbf16> to vector<16x16x4xbf16>
    %42 = vector.shape_cast %41 : vector<16x16x4xbf16> to vector<256x4xbf16>
    %c5 = arith.constant 5 : index
    %c0_21 = arith.constant 0 : index
    %c0_22 = arith.constant 0 : index
    %43 = vector.load %arg3[%c5, %c0_21, %c0_22] : memref<9x4x8xbf16, #tpu.memory_space<vmem>>, vector<1x4x8xbf16>
    %44 = vector.shape_cast %43 : vector<1x4x8xbf16> to vector<4x8xbf16>
    %cst_23 = arith.constant dense<0.000000e+00> : vector<256x8xf32>
    %45 = tpu.matmul %42, %44, %cst_23 {dimension_numbers = #tpu.dot_dimension_numbers<[1], [0], [0], [1], [0, 0, 1, 1], [], []>} : vector<256x4xbf16>, vector<4x8xbf16>, vector<256x8xf32> -> vector<256x8xf32>
    %46 = arith.addf %40, %45 : vector<256x8xf32>
    %c2_i32 = arith.constant 2 : i32
    %47 = arith.addi %1, %c2_i32 : i32
    %c0_24 = arith.constant 0 : index
    %48 = arith.index_cast %47 : i32 to index
    %c0_25 = arith.constant 0 : index
    %c0_26 = arith.constant 0 : index
    %49 = vector.load %arg2[%c0_24, %48, %c0_25, %c0_26] : memref<1x18x18x4xbf16, #tpu.memory_space<vmem>>, vector<1x16x18x4xbf16>
    %50 = vector.shape_cast %49 : vector<1x16x18x4xbf16> to vector<16x18x4xbf16>
    %51 = vector.extract_strided_slice %50 {offsets = [0, 0, 0], sizes = [16, 16, 4], strides = [1, 1, 1]} : vector<16x18x4xbf16> to vector<16x16x4xbf16>
    %52 = vector.shape_cast %51 : vector<16x16x4xbf16> to vector<256x4xbf16>
    %c6 = arith.constant 6 : index
    %c0_27 = arith.constant 0 : index
    %c0_28 = arith.constant 0 : index
    %53 = vector.load %arg3[%c6, %c0_27, %c0_28] : memref<9x4x8xbf16, #tpu.memory_space<vmem>>, vector<1x4x8xbf16>
    %54 = vector.shape_cast %53 : vector<1x4x8xbf16> to vector<4x8xbf16>
    %cst_29 = arith.constant dense<0.000000e+00> : vector<256x8xf32>
    %55 = tpu.matmul %52, %54, %cst_29 {dimension_numbers = #tpu.dot_dimension_numbers<[1], [0], [0], [1], [0, 0, 1, 1], [], []>} : vector<256x4xbf16>, vector<4x8xbf16>, vector<256x8xf32> -> vector<256x8xf32>
    %56 = arith.addf %46, %55 : vector<256x8xf32>
    %57 = vector.extract_strided_slice %50 {offsets = [0, 1, 0], sizes = [16, 16, 4], strides = [1, 1, 1]} : vector<16x18x4xbf16> to vector<16x16x4xbf16>
    %58 = vector.shape_cast %57 : vector<16x16x4xbf16> to vector<256x4xbf16>
    %c7 = arith.constant 7 : index
    %c0_30 = arith.constant 0 : index
    %c0_31 = arith.constant 0 : index
    %59 = vector.load %arg3[%c7, %c0_30, %c0_31] : memref<9x4x8xbf16, #tpu.memory_space<vmem>>, vector<1x4x8xbf16>
    %60 = vector.shape_cast %59 : vector<1x4x8xbf16> to vector<4x8xbf16>
    %cst_32 = arith.constant dense<0.000000e+00> : vector<256x8xf32>
    %61 = tpu.matmul %58, %60, %cst_32 {dimension_numbers = #tpu.dot_dimension_numbers<[1], [0], [0], [1], [0, 0, 1, 1], [], []>} : vector<256x4xbf16>, vector<4x8xbf16>, vector<256x8xf32> -> vector<256x8xf32>
    %62 = arith.addf %56, %61 : vector<256x8xf32>
    %63 = vector.extract_strided_slice %50 {offsets = [0, 2, 0], sizes = [16, 16, 4], strides = [1, 1, 1]} : vector<16x18x4xbf16> to vector<16x16x4xbf16>
    %64 = vector.shape_cast %63 : vector<16x16x4xbf16> to vector<256x4xbf16>
    %c8 = arith.constant 8 : index
    %c0_33 = arith.constant 0 : index
    %c0_34 = arith.constant 0 : index
    %65 = vector.load %arg3[%c8, %c0_33, %c0_34] : memref<9x4x8xbf16, #tpu.memory_space<vmem>>, vector<1x4x8xbf16>
    %66 = vector.shape_cast %65 : vector<1x4x8xbf16> to vector<4x8xbf16>
    %cst_35 = arith.constant dense<0.000000e+00> : vector<256x8xf32>
    %67 = tpu.matmul %64, %66, %cst_35 {dimension_numbers = #tpu.dot_dimension_numbers<[1], [0], [0], [1], [0, 0, 1, 1], [], []>} : vector<256x4xbf16>, vector<4x8xbf16>, vector<256x8xf32> -> vector<256x8xf32>
    %68 = arith.addf %62, %67 : vector<256x8xf32>
    %c0_36 = arith.constant 0 : index
    %c0_37 = arith.constant 0 : index
    %69 = vector.load %arg4[%c0_36, %c0_37] : memref<1x8xf32, #tpu.memory_space<vmem>>, vector<1x8xf32>
    %70 = vector.broadcast %69 : vector<1x8xf32> to vector<256x8xf32>
    %71 = arith.addf %68, %70 : vector<256x8xf32>
    %cst_38 = arith.constant 0.000000e+00 : f32
    %72 = vector.broadcast %cst_38 : f32 to vector<256x8xf32>
    %73 = arith.maximumf %71, %72 : vector<256x8xf32>
    %c0_39 = arith.constant 0 : index
    %c0_40 = arith.constant 0 : index
    %c0_41 = arith.constant 0 : index
    %74 = vector.load %arg5[%c0_39, %c0_40, %c0_41] : memref<1x256x8xf32, #tpu.memory_space<vmem>>, vector<1x256x8xf32>
    %75 = vector.shape_cast %74 : vector<1x256x8xf32> to vector<256x8xf32>
    %76 = vector.shape_cast %73 : vector<256x8xf32> to vector<1x256x8xf32>
    tpu.vector_store %arg5[%c0_39, %c0_40, %c0_41], %76 {strides = array<i32>} : memref<1x256x8xf32, #tpu.memory_space<vmem>>, vector<1x256x8xf32>,
    return
  }
  func.func @transform_0(%arg0: i32, %arg1: i32) -> (i32, i32, i32, i32) {
    %c0_i32 = arith.constant 0 : i32
    %c0_i32_0 = arith.constant 0 : i32
    %c0_i32_1 = arith.constant 0 : i32
    %c0_i32_2 = arith.constant 0 : i32
    return %arg0, %c0_i32, %c0_i32_0, %c0_i32_1 : i32, i32, i32, i32
  }
  func.func @transform_1(%arg0: i32, %arg1: i32) -> (i32, i32, i32) {
    %c0_i32 = arith.constant 0 : i32
    %c0_i32_0 = arith.constant 0 : i32
    %c0_i32_1 = arith.constant 0 : i32
    %c0_i32_2 = arith.constant 0 : i32
    return %c0_i32, %c0_i32_0, %c0_i32_1 : i32, i32, i32
  }
  func.func @transform_2(%arg0: i32, %arg1: i32) -> (i32, i32) {
    %c0_i32 = arith.constant 0 : i32
    %c0_i32_0 = arith.constant 0 : i32
    %c0_i32_1 = arith.constant 0 : i32
    return %c0_i32, %c0_i32_0 : i32, i32
  }
  func.func @transform_3(%arg0: i32, %arg1: i32) -> (i32, i32, i32) {
    %c0_i32 = arith.constant 0 : i32
    %c0_i32_0 = arith.constant 0 : i32
    return %arg0, %arg1, %c0_i32 : i32, i32, i32
  }
}

</mosaic_0001>

<bundles_post_ra>
// kernel: tpu_custom_call.1
= control target key start
LH: loop header
LB: loop body
LE: loop exit
PB: predicated region body
PF: predicated region fallthrough
CT: control target
= control target key end

     0   :  { %s6175_s12 = smov 0   ;;  %s6177_s13 = smov 0   ;;  %s8279_s0 = inlined_call_operand.vmem [shape: bf16[2,18,18,4], index: 0, kind: input, shape index: {}]   ;;  %s8280_s1 = inlined_call_operand.vmem [shape: bf16[9,4,8], index: 1, kind: input, shape index: {}]   ;;  %s8281_s2 = inlined_call_operand.vmem [shape: f32[1,8], index: 2, kind: input, shape index: {}]   ;;  %s8282_s3 = inlined_call_operand.vmem [shape: f32[2,256,8], index: 3, kind: output, shape index: {}]  }
   0x1   :  { %s6179_s14 = smov 0  }
   0x2 LB: > { %s25_s15 = sadd.s32 1, %s6149_s13  ;;  %p4771_p0 = scmp.ge.s32.totalorder %s6153_s14, 1  ;;  %s6153_s14 = sphi %s6179_s14, %s13_s14   ;;  %s6149_s13 = sphi %s6177_s13, %s8396_s13   ;;  %s6145_s12 = sphi %s6175_s12, %s8395_s12  }
   0x3   : > { %p27_p1 = scmp.ge.s32.totalorder %s25_s15, 2  ;;  %p151_p2 = scmp.lt.s32.totalorder %s6153_s14, 3 }
   0x5   : > { %s8398_s15 = smov (%p27_p1, %s25_s15), 0  ;;  %p152_p3 = pnand %p4771_p0, %p151_p2 }
   0x7   : > { %155 = sbr.rel (%p152_p3) target bundleno = 592 (0x250), region = 32 }
   0xe   : > { %v4775_v0 = vld [vmem:[%s8280_s1 + $0x2] sm:$0x3]  ;;  %vm734_vm0 = vcmask 1041408   ;;  %v4970_v1 = vld [vmem:[%s8280_s1 + $0x8] sm:$0x3]  ;;  %p179_p4 = scmp.lt.s32.totalorder %s6145_s12, 1 }
   0xf   : > { %5936 = vmatprep.subr.msk.bf16.mxu1 %vm734_vm0, %v4775_v0  ;;  %5940 = vmatprep.subr.msk.bf16.mxu0 %vm734_vm0, %v4970_v1  ;;  %v736_v2 = vsel %vm734_vm0, %v4775_v0, 0  ;;  %v6203_v3 = vsel %vm734_vm0, %v4970_v1, 0  ;;  %v247_v4 = vld [vmem:[%s8280_s1] sm:$0x3]  ;;  %v5019_v5 = vld [vmem:[%s8280_s1 + $0xa] sm:$0x3] }
  0x10   : > { %8305 = vst [vmem:[#allocation2_spill] sm:$0xff] %v6203_v3  ;;  %5373 = vmatpush3.bf16.msra.mxu1 %v736_v2  ;;  %5509 = vmatpush3.bf16.msra.mxu0 %v6203_v3  ;;  %s8400_s12 = smov (!%p179_p4, %s6145_s12), 1  ;;  %vm248_vm1 = vsmask.f32 3328  ;;  %vm249_vm2 = vsmask.f32 7440 }
  0x11   : > { %5937 = vmatprep.subr.msk.bf16.mxu1 %vm734_vm0, %v247_v4  ;;  %5942 = vmatprep.subr.msk.bf16.mxu0 %vm734_vm0, %v5019_v5  ;;  %s5946_s24 = smul.u32 216, %s8400_s12  ;;  %vm685_vm3 = vcmask 31744   ;;  %v6235_v17 = vsel %vm734_vm0, %v247_v4, 0  ;;  %vm6246_vm4 = vmor %vm248_vm1, %vm249_vm2  ;;  %v6251_v36 = vsel %vm734_vm0, %v5019_v5, 0  ;;  %v6261_v50 = vld [vmem:[%s8280_s1 + $0xc] sm:$0x3] }
  0x12   : > { %v6278_v1 = vsel %vm734_vm0, %v6261_v50, 0  ;;  %vm1207_vm5 = vcmask 1042432   ;;  %vm1208_vm6 = vcmask 1046532   ;;  %s5218_s21 = sshll.u32 %s8400_s12, 8  ;;  %vm4643_vm8 = vcmask 64512  }
  0x13   : > { %s6220_s27 = scalar_lea.vmem %s8279_s0, %s5946_s24  ;;  %vm6512_vm7 = vmor %vm1207_vm5, %vm1208_vm6  ;;  %s8169_s24 = scalar_lea.vmem %s8282_s3, %s5218_s21 }
  0x14   : > { %v199_v6 = vld [vmem:[%s6220_s27] sm:$0xf]  ;;  %v200_v7 = vld [vmem:[%s6220_s27 + $0x4] sm:$0xf]  ;;  %v201_v8 = vld [vmem:[%s6220_s27 + $0x8] sm:$0x1] }
  0x15   : > { %v252_v9 = vshrl.u32 %v199_v6, 16  ;;  %v255_v10 = vshll.u32 %v199_v6, 16  ;;  %v261_v11 = vshll.u32 %v200_v7, 16  ;;  %v265_v12 = vshrl.u32 %v200_v7, 16  ;;  %v6226_v13 = vld [vmem:[%s6220_s27 + $0xc] sm:$0xf] }
  0x16   : > { %v271_v14 = vshll.u32 %v201_v8, 16  ;;  %v6229_v15 = vld [vmem:[%s6220_s27 + $0x10] sm:$0xf]  ;;  %v6232_v16 = vld [vmem:[%s6220_s27 + $0x14] sm:$0x1]  ;;  %v1995_v23 = vshrl.u32 %v6226_v13, 16 }
  0x17   : > { %v254_v18 = vrot.slane %v252_v9, 4  ;;  %v257_v19 = vrot.slane %v255_v10, 5  ;;  %v263_v20 = vrot.slane %v261_v11, 5  ;;  %v267_v21 = vrot.slane %v265_v12, 4  ;;  %v202_v30 = vld [vmem:[%s6220_s27 + $0xc] sm:$0xf] }
  0x18   : > { %v273_v22 = vrot.slane %v271_v14, 5  ;;  %v1998_v24 = vshll.u32 %v6226_v13, 16  ;;  %v2004_v25 = vshll.u32 %v6229_v15, 16  ;;  %v2008_v28 = vshrl.u32 %v6229_v15, 16  ;;  %v203_v31 = vld [vmem:[%s6220_s27 + $0x10] sm:$0xf] }
  0x19   : > { %v258_v26 = vor.u32 %v257_v19, %v254_v18  ;;  %v268_v27 = vor.u32 %v267_v21, %v263_v20  ;;  %v2014_v29 = vshll.u32 %v6232_v16, 16  ;;  %v1997_v33 = vrot.slane %v1995_v23, 4  ;;  %v204_v42 = vld [vmem:[%s6220_s27 + $0x14] sm:$0x1]  ;;  %v6264_v55 = vld [vmem:[%s6220_s27 + $0x18] sm:$0xf] }
  0x1a   : > { %v2000_v34 = vrot.slane %v1998_v24, 5  ;;  %v2006_v35 = vrot.slane %v2004_v25, 5  ;;  %v2010_v39 = vrot.slane %v2008_v28, 4  ;;  %v276_v43 = vshrl.u32 %v202_v30, 16  ;;  %v6267_v60 = vld [vmem:[%s6220_s27 + $0x1c] sm:$0xf] }
  0x1b   : > { %v259_v37 = vrot.slane %v258_v26, 4  ;;  %v269_v38 = vrot.slane %v268_v27, 4  ;;  %v2016_v40 = vrot.slane %v2014_v29, 5  ;;  %v279_v44 = vshll.u32 %v202_v30, 16  ;;  %v6274_v0 = vld [vmem:[%s6220_s27 + $0x20] sm:$0x1] }
  0x1c   : > { %v2001_v41 = vor.u32 %v2000_v34, %v1997_v33  ;;  %v285_v45 = vshll.u32 %v203_v31, 16  ;;  %v2011_v48 = vor.u32 %v2010_v39, %v2006_v35  ;;  %v289_v49 = vshrl.u32 %v203_v31, 16  ;;  %v205_v11 = vld [vmem:[%s6220_s27 + $0x18] sm:$0xf]  ;;  %v207_v25 = vld [vmem:[%s6220_s27 + $0x20] sm:$0x1] }
  0x1d   : > { %v264_v46 = vsel %vm6246_vm4, %v259_v37, %v263_v20  ;;  %v274_v47 = vsel %vm6246_vm4, %v269_v38, %v273_v22  ;;  %v278_v53 = vrot.slane %v276_v43, 4  ;;  %v281_v54 = vrot.slane %v279_v44, 5  ;;  %v206_v20 = vld [vmem:[%s6220_s27 + $0x1c] sm:$0xf]  ;;  %v6298_v30 = vld [vmem:[%s6220_s27 + $0x24] sm:$0xf] }
  0x1e   : > { %v4776_v51 = vcombine.low %v264_v46, %v274_v47  ;;  %v2002_v52 = vrot.slane %v2001_v41, 4  ;;  %v2012_v56 = vrot.slane %v2011_v48, 4  ;;  %v287_v57 = vrot.slane %v285_v45, 5  ;;  %v4856_v41 = vld [vmem:[%s8280_s1 + $0x4] sm:$0x3] }
  0x1f   : > { %v291_v58 = vrot.slane %v289_v49, 4  ;;  %v295_v59 = vshll.u32 %v204_v42, 16  ;;  %v2693_v62 = vrot.slane %v6232_v16, 5  ;;  %v282_v63 = vor.u32 %v281_v54, %v278_v53  ;;  %v6305_v45 = vld [vmem:[%s6220_s27 + $0x28] sm:$0xf] }
  0x20   : > { %5374 = vmatprep.mubr.msk.bf16.mxu1 %vm685_vm3, %v4776_v51  ;;  %v2007_v61 = vsel %vm6246_vm4, %v2002_v52, %v2006_v35  ;;  %v2017_v2 = vsel %vm6246_vm4, %v2012_v56, %v2016_v40  ;;  %v2019_v6 = vshrl.u32 %v6264_v55, 16  ;;  %v2022_v9 = vshll.u32 %v6264_v55, 16  ;;  %v6310_v52 = vld [vmem:[%s6220_s27 + $0x2c] sm:$0x1]  ;;  %v7094_v3 = vld [vmem:[%s6220_s27 + $0xb8] sm:$0xf] }
  0x21   : > { %v292_v4 = vor.u32 %v291_v58, %v287_v57  ;;  %v297_v5 = vrot.slane %v295_v59, 5  ;;  %v4971_v7 = vcombine.low %v2007_v61, %v2017_v2  ;;  %v283_v8 = vrot.slane %v282_v63, 4  ;;  %v208_v58 = vld [vmem:[%s6220_s27 + $0x24] sm:$0xf] }
  0x22   : > { %v2028_v10 = vshll.u32 %v6267_v60, 16  ;;  %v2021_v14 = vrot.slane %v2019_v6, 4  ;;  %v2032_v18 = vshrl.u32 %v6267_v60, 16  ;;  %v2038_v19 = vshll.u32 %v6274_v0, 16 }
  0x23   : > { %v293_v12 = vrot.slane %v292_v4, 4  ;;  %5510 = vmatprep.mubr.msk.bf16.mxu0 %vm685_vm3, %v4971_v7  ;;  %v288_v21 = vsel %vm6246_vm4, %v283_v8, %v287_v57  ;;  %v2024_v22 = vrot.slane %v2022_v9, 5  ;;  %v2697_v24 = vrot.slane %v6267_v60, 5  ;;  %v209_v7 = vld [vmem:[%s6220_s27 + $0x28] sm:$0xf] }
  0x24   : > { %v2030_v23 = vrot.slane %v2028_v10, 5  ;;  %v2034_v27 = vrot.slane %v2032_v18, 4  ;;  %v2040_v28 = vrot.slane %v2038_v19, 5  ;;  %v2700_v29 = vrot.slane %v6274_v0, 5  ;;  %v210_v19 = vld [vmem:[%s6220_s27 + $0x2c] sm:$0x1] }
  0x25   : > { %v298_v26 = vsel %vm6246_vm4, %v293_v12, %v297_v5  ;;  %v2025_v33 = vor.u32 %v2024_v22, %v2021_v14  ;;  %v300_v34 = vshrl.u32 %v205_v11, 16  ;;  %v303_v35 = vshll.u32 %v205_v11, 16 }
  0x26   : > { %v4777_v31 = vcombine.low %v288_v21, %v298_v26  ;;  %v2035_v37 = vor.u32 %v2034_v27, %v2030_v23  ;;  %v309_v38 = vshll.u32 %v206_v20, 16  ;;  %v313_v39 = vshrl.u32 %v206_v20, 16  ;;  %v6328_v21 = vld [vmem:[%s6220_s27 + $0x30] sm:$0xf] }
  0x27   : > { %v319_v40 = vshll.u32 %v207_v25, 16  ;;  %v2026_v42 = vrot.slane %v2025_v33, 4  ;;  %v302_v43 = vrot.slane %v300_v34, 4  ;;  %v305_v44 = vrot.slane %v303_v35, 5  ;;  %v6334_v34 = vld [vmem:[%s6220_s27 + $0x34] sm:$0xf] }
  0x28   : > { %5375 = vmatmul.mubr.msk.bf16.vlgmr.msra.gmra.mrb[0].mxu1 %vm685_vm3, %v4777_v31  ;;  %v2043_v46 = vshrl.u32 %v6298_v30, 16  ;;  %v2036_v47 = vrot.slane %v2035_v37, 4  ;;  %v311_v48 = vrot.slane %v309_v38, 5  ;;  %v315_v49 = vrot.slane %v313_v39, 4 }
  0x29   : > { %5407 = vmatpush3.bf16.msra.mxu1 %v6235_v17  ;;  %v321_v51 = vrot.slane %v319_v40, 5  ;;  %v2031_v53 = vsel %vm6246_vm4, %v2026_v42, %v2030_v23  ;;  %v306_v54 = vor.u32 %v305_v44, %v302_v43  ;;  %v2046_v57 = vshll.u32 %v6298_v30, 16  ;;  %v6343_v42 = vld [vmem:[%s6220_s27 + $0x38] sm:$0x1]  ;;  %v6347_v44 = vld [vmem:[%s6220_s27 + $0x30] sm:$0xf] }
  0x2a   : > { %v2045_v56 = vrot.slane %v2043_v46, 4  ;;  %5938 = vmatprep.subr.msk.bf16.mxu1 %vm734_vm0, %v4856_v41  ;;  %v2041_v17 = vsel %vm6246_vm4, %v2036_v47, %v2040_v28  ;;  %v316_v59 = vor.u32 %v315_v49, %v311_v48  ;;  %v2052_v61 = vshll.u32 %v6305_v45, 16 }
  0x2b   : > { %v2056_v63 = vshrl.u32 %v6305_v45, 16  ;;  %v4972_v2 = vcombine.low %v2031_v53, %v2041_v17  ;;  %v307_v4 = vrot.slane %v306_v54, 4  ;;  %v2048_v5 = vrot.slane %v2046_v57, 5 }
  0x2c   : > { %v2062_v6 = vshll.u32 %v6310_v52, 16  ;;  %v317_v8 = vrot.slane %v316_v59, 4  ;;  %v2054_v9 = vrot.slane %v2052_v61, 5  ;;  %v324_v11 = vshrl.u32 %v208_v58, 16 }
  0x2d   : > { %v2058_v10 = vrot.slane %v2056_v63, 4  ;;  %5511 = vmatmul.mubr.msk.bf16.vlgmr.msra.gmra.mrb[0].mxu0 %vm685_vm3, %v4972_v2  ;;  %v312_v12 = vsel %vm6246_vm4, %v307_v4, %v311_v48  ;;  %v2049_v14 = vor.u32 %v2048_v5, %v2045_v56  ;;  %v327_v20 = vshll.u32 %v208_v58, 16  ;;  %v6353_v56 = vld [vmem:[%s6220_s27 + $0x34] sm:$0xf]  ;;  %v213_v4 = vld [vmem:[%s6220_s27 + $0x38] sm:$0x1] }
  0x2e   : > { %v2064_v18 = vrot.slane %v2062_v6, 5  ;;  %5543 = vmatpush3.bf16.msra.mxu0 %v6251_v36  ;;  %v322_v22 = vsel %vm6246_vm4, %v317_v8, %v321_v51  ;;  %v326_v25 = vrot.slane %v324_v11, 4  ;;  %v333_v26 = vshll.u32 %v209_v7, 16 }
  0x2f   : > { %v2059_v23 = vor.u32 %v2058_v10, %v2054_v9  ;;  %v4778_v27 = vcombine.low %v312_v12, %v322_v22  ;;  %v2050_v28 = vrot.slane %v2049_v14, 4  ;;  %v329_v31 = vrot.slane %v327_v20, 5  ;;  %5943 = vmatprep.subr.msk.bf16.mxu0 %vm734_vm0, %v6261_v50  ;;  %v6365_v10 = vld [vmem:[%s6220_s27 + $0x3c] sm:$0xf] }
  0x30   : > { %v337_v33 = vshrl.u32 %v209_v7, 16  ;;  %v335_v37 = vrot.slane %v333_v26, 5  ;;  %v343_v36 = vshll.u32 %v210_v19, 16  ;;  %v2067_v38 = vshrl.u32 %v6328_v21, 16  ;;  %v6371_v19 = vld [vmem:[%s6220_s27 + $0x40] sm:$0xf] }
  0x31   : > { %v2060_v35 = vrot.slane %v2059_v23, 4  ;;  %5378 = vmatprep.mubr.msk.bf16.mxu1 %vm685_vm3, %v4778_v27  ;;  %v2055_v39 = vsel %vm6246_vm4, %v2050_v28, %v2054_v9  ;;  %v330_v40 = vor.u32 %v329_v31, %v326_v25  ;;  %v2070_v43 = vshll.u32 %v6328_v21, 16  ;;  %v6376_v31 = vld [vmem:[%s6220_s27 + $0x44] sm:$0x1] }
  0x32   : > { %v339_v41 = vrot.slane %v337_v33, 4  ;;  %v345_v46 = vrot.slane %v343_v36, 5  ;;  %v2069_v47 = vrot.slane %v2067_v38, 4  ;;  %v2076_v48 = vshll.u32 %v6334_v34, 16 }
  0x33   : > { %v2065_v50 = vsel %vm6246_vm4, %v2060_v35, %v2064_v18  ;;  %v331_v51 = vrot.slane %v330_v40, 4  ;;  %v2072_v54 = vrot.slane %v2070_v43, 5  ;;  %v2080_v58 = vshrl.u32 %v6334_v34, 16 }
  0x34   : > { %v4973_v49 = vcombine.low %v2055_v39, %v2065_v50  ;;  %v340_v53 = vor.u32 %v339_v41, %v335_v37  ;;  %v2078_v57 = vrot.slane %v2076_v48, 5  ;;  %v2086_v17 = vshll.u32 %v6343_v42, 16  ;;  %v6384_v50 = vld [vmem:[%s6220_s27 + $0x3c] sm:$0xf] }
  0x35   : > { %v348_v59 = vshrl.u32 %v6347_v44, 16  ;;  %v336_v61 = vsel %vm6246_vm4, %v331_v51, %v335_v37  ;;  %v2073_v2 = vor.u32 %v2072_v54, %v2069_v47  ;;  %v351_v5 = vshll.u32 %v6347_v44, 16  ;;  %v6390_v51 = vld [vmem:[%s6220_s27 + $0x40] sm:$0xf] }
  0x36   : > { %5514 = vmatprep.mubr.msk.bf16.mxu0 %vm685_vm3, %v4973_v49  ;;  %v341_v63 = vrot.slane %v340_v53, 4  ;;  %v2082_v6 = vrot.slane %v2080_v58, 4  ;;  %v2088_v7 = vrot.slane %v2086_v17, 5  ;;  %v357_v9 = vshll.u32 %v6353_v56, 16 }
  0x37   : > { %v350_v8 = vrot.slane %v348_v59, 4  ;;  %v2074_v12 = vrot.slane %v2073_v2, 4  ;;  %v353_v14 = vrot.slane %v351_v5, 5  ;;  %v361_v18 = vshrl.u32 %v6353_v56, 16 }
  0x38   : > { %v346_v11 = vsel %vm6246_vm4, %v341_v63, %v345_v46  ;;  %v2083_v22 = vor.u32 %v2082_v6, %v2078_v57  ;;  %v359_v23 = vrot.slane %v357_v9, 5  ;;  %v367_v25 = vshll.u32 %v213_v4, 16 }
  0x39   : > { %v4779_v20 = vcombine.low %v336_v61, %v346_v11  ;;  %v2079_v26 = vsel %vm6246_vm4, %v2074_v12, %v2078_v57  ;;  %v354_v27 = vor.u32 %v353_v14, %v350_v8  ;;  %v363_v28 = vrot.slane %v361_v18, 4  ;;  %v216_v61 = vld [vmem:[%s6220_s27 + $0x44] sm:$0x1]  ;;  %v6403_v8 = vld [vmem:[%s6220_s27 + $0x48] sm:$0xf] }
  0x3a   : > { %v2091_v33 = vshrl.u32 %v6365_v10, 16  ;;  %v2084_v35 = vrot.slane %v2083_v22, 4  ;;  %v369_v37 = vrot.slane %v367_v25, 5  ;;  %v2094_v36 = vshll.u32 %v6365_v10, 16  ;;  %v6406_v18 = vld [vmem:[%s6220_s27 + $0x4c] sm:$0xf] }
  0x3b   : > { %5379 = vmatmul.mubr.msk.bf16.gmra.mrb[4].mxu1 %vm685_vm3, %v4779_v20  ;;  %v2100_v38 = vshll.u32 %v6371_v19, 16  ;;  %v355_v39 = vrot.slane %v354_v27, 4  ;;  %v364_v40 = vor.u32 %v363_v28, %v359_v23  ;;  %v2104_v43 = vshrl.u32 %v6371_v19, 16  ;;  %v6412_v28 = vld [vmem:[%s6220_s27 + $0x50] sm:$0x1] }
  0x3c   : > { %v2093_v41 = vrot.slane %v2091_v33, 4  ;;  %v2089_v46 = vsel %vm6246_vm4, %v2084_v35, %v2088_v7  ;;  %v2096_v47 = vrot.slane %v2094_v36, 5  ;;  %v2110_v49 = vshll.u32 %v6376_v31, 16 }
  0x3d   : > { %v2102_v48 = vrot.slane %v2100_v38, 5  ;;  %v4974_v53 = vcombine.low %v2079_v26, %v2089_v46  ;;  %v360_v54 = vsel %vm6246_vm4, %v355_v39, %v359_v23  ;;  %v365_v57 = vrot.slane %v364_v40, 4  ;;  %v6420_v40 = vld [vmem:[%s6220_s27 + $0x48] sm:$0xf] }
  0x3e   : > { %v2106_v58 = vrot.slane %v2104_v43, 4  ;;  %v2097_v17 = vor.u32 %v2096_v47, %v2093_v41  ;;  %v2112_v59 = vrot.slane %v2110_v49, 5  ;;  %v372_v63 = vshrl.u32 %v6384_v50, 16 }
  0x3f   : > { %v375_v2 = vshll.u32 %v6384_v50, 16  ;;  %5515 = vmatmul.mubr.msk.bf16.gmra.mrb[4].mxu0 %vm685_vm3, %v4974_v53  ;;  %v370_v4 = vsel %vm6246_vm4, %v365_v57, %v369_v37  ;;  %v381_v6 = vshll.u32 %v6390_v51, 16  ;;  %v385_v7 = vshrl.u32 %v6390_v51, 16 }
  0x40   : > { %v2107_v5 = vor.u32 %v2106_v58, %v2102_v48  ;;  %v4780_v9 = vcombine.low %v360_v54, %v370_v4  ;;  %v2098_v11 = vrot.slane %v2097_v17, 4  ;;  %v374_v12 = vrot.slane %v372_v63, 4 }
  0x41   : > { %v377_v14 = vrot.slane %v375_v2, 5  ;;  %v383_v22 = vrot.slane %v381_v6, 5  ;;  %v387_v23 = vrot.slane %v385_v7, 4  ;;  %v391_v25 = vshll.u32 %v216_v61, 16  ;;  %v6437_v7 = vld [vmem:[%s6220_s27 + $0x54] sm:$0xf] }
  0x42   : > { %v2108_v20 = vrot.slane %v2107_v5, 4  ;;  %5382 = vmatprep.mubr.msk.bf16.mxu1 %vm685_vm3, %v4780_v9  ;;  %v2103_v26 = vsel %vm6246_vm4, %v2098_v11, %v2102_v48  ;;  %v2115_v33 = vshrl.u32 %v6403_v8, 16  ;;  %v2118_v35 = vshll.u32 %v6403_v8, 16  ;;  %v6423_v48 = vld [vmem:[%s6220_s27 + $0x4c] sm:$0xf] }
  0x43   : > { %v378_v27 = vor.u32 %v377_v14, %v374_v12  ;;  %v388_v36 = vor.u32 %v387_v23, %v383_v22  ;;  %v393_v38 = vrot.slane %v391_v25, 5  ;;  %v2124_v39 = vshll.u32 %v6406_v18, 16 }
  0x44   : > { %v2113_v37 = vsel %vm6246_vm4, %v2108_v20, %v2112_v59  ;;  %v2117_v46 = vrot.slane %v2115_v33, 4  ;;  %v2120_v47 = vrot.slane %v2118_v35, 5  ;;  %v2128_v54 = vshrl.u32 %v6406_v18, 16  ;;  %v219_v59 = vld [vmem:[%s6220_s27 + $0x50] sm:$0x1] }
  0x45   : > { %v4975_v41 = vcombine.low %v2103_v26, %v2113_v37  ;;  %v379_v43 = vrot.slane %v378_v27, 4  ;;  %v389_v49 = vrot.slane %v388_v36, 4  ;;  %v2126_v53 = vrot.slane %v2124_v39, 5  ;;  %v6440_v20 = vld [vmem:[%s6220_s27 + $0x58] sm:$0xf] }
  0x46   : > { %v2134_v57 = vshll.u32 %v6412_v28, 16  ;;  %v2121_v17 = vor.u32 %v2120_v47, %v2117_v46  ;;  %v396_v61 = vshrl.u32 %v6420_v40, 16  ;;  %v399_v63 = vshll.u32 %v6420_v40, 16  ;;  %v6447_v35 = vld [vmem:[%s6220_s27 + $0x5c] sm:$0x1] }
  0x47   : > { %5518 = vmatprep.mubr.msk.bf16.mxu0 %vm685_vm3, %v4975_v41  ;;  %v384_v58 = vsel %vm6246_vm4, %v379_v43, %v383_v22  ;;  %v394_v2 = vsel %vm6246_vm4, %v389_v49, %v393_v38  ;;  %v2130_v4 = vrot.slane %v2128_v54, 4  ;;  %v405_v6 = vshll.u32 %v6423_v48, 16 }
  0x48   : > { %v2136_v5 = vrot.slane %v2134_v57, 5  ;;  %v4781_v9 = vcombine.low %v384_v58, %v394_v2  ;;  %v2122_v11 = vrot.slane %v2121_v17, 4  ;;  %v398_v12 = vrot.slane %v396_v61, 4  ;;  %v6460_v61 = vld [vmem:[%s6220_s27 + $0x58] sm:$0xf] }
  0x49   : > { %v401_v14 = vrot.slane %v399_v63, 5  ;;  %v2131_v22 = vor.u32 %v2130_v4, %v2126_v53  ;;  %v407_v23 = vrot.slane %v405_v6, 5  ;;  %v409_v25 = vshrl.u32 %v6423_v48, 16 }
  0x4a   : > { %v415_v26 = vshll.u32 %v219_v59, 16  ;;  %5383 = vmatmul.mubr.msk.bf16.gmra.mrb[8].mxu1 %vm685_vm3, %v4781_v9  ;;  %v2127_v27 = vsel %vm6246_vm4, %v2122_v11, %v2126_v53  ;;  %v2139_v37 = vshrl.u32 %v6437_v7, 16  ;;  %v2142_v36 = vshll.u32 %v6437_v7, 16  ;;  %v6454_v53 = vld [vmem:[%s6220_s27 + $0x54] sm:$0xf] }
  0x4b   : > { %v402_v33 = vor.u32 %v401_v14, %v398_v12  ;;  %v2132_v38 = vrot.slane %v2131_v22, 4  ;;  %v411_v39 = vrot.slane %v409_v25, 4  ;;  %v2148_v43 = vshll.u32 %v6440_v20, 16  ;;  %v222_v9 = vld [vmem:[%s6220_s27 + $0x5c] sm:$0x1] }
  0x4c   : > { %v417_v41 = vrot.slane %v415_v26, 5  ;;  %v2141_v47 = vrot.slane %v2139_v37, 4  ;;  %v2144_v49 = vrot.slane %v2142_v36, 5  ;;  %v2152_v54 = vshrl.u32 %v6440_v20, 16 }
  0x4d   : > { %v403_v46 = vrot.slane %v402_v33, 4  ;;  %v2137_v57 = vsel %vm6246_vm4, %v2132_v38, %v2136_v5  ;;  %v412_v58 = vor.u32 %v411_v39, %v407_v23  ;;  %v2150_v17 = vrot.slane %v2148_v43, 5  ;;  %v6476_v39 = vld [vmem:[%s6220_s27 + $0x64] sm:$0xf] }
  0x4e   : > { %v2158_v59 = vshll.u32 %v6447_v35, 16  ;;  %v4976_v63 = vcombine.low %v2127_v27, %v2137_v57  ;;  %v2145_v4 = vor.u32 %v2144_v49, %v2141_v47  ;;  %v2154_v6 = vrot.slane %v2152_v54, 4 }
  0x4f   : > { %v408_v2 = vsel %vm6246_vm4, %v403_v46, %v407_v23  ;;  %v413_v11 = vrot.slane %v412_v58, 4  ;;  %v420_v14 = vshrl.u32 %v6454_v53, 16  ;;  %v423_v5 = vshll.u32 %v6454_v53, 16  ;;  %v6471_v23 = vld [vmem:[%s6220_s27 + $0x60] sm:$0xf] }
  0x50   : > { %v2160_v12 = vrot.slane %v2158_v59, 5  ;;  %5519 = vmatmul.mubr.msk.bf16.gmra.mrb[8].mxu0 %vm685_vm3, %v4976_v63  ;;  %v2146_v22 = vrot.slane %v2145_v4, 4  ;;  %v2155_v25 = vor.u32 %v2154_v6, %v2150_v17  ;;  %v429_v26 = vshll.u32 %v6460_v61, 16  ;;  %v6481_v59 = vld [vmem:[%s6220_s27 + $0x68] sm:$0x1] }
  0x51   : > { %v433_v27 = vshrl.u32 %v6460_v61, 16  ;;  %v418_v33 = vsel %vm6246_vm4, %v413_v11, %v417_v41  ;;  %v422_v37 = vrot.slane %v420_v14, 4  ;;  %v425_v36 = vrot.slane %v423_v5, 5  ;;  %v6491_v6 = vld [vmem:[%s6220_s27 + $0x60] sm:$0xf] }
  0x52   : > { %v439_v38 = vshll.u32 %v222_v9, 16  ;;  %v4782_v43 = vcombine.low %v408_v2, %v418_v33  ;;  %v2151_v46 = vsel %vm6246_vm4, %v2146_v22, %v2150_v17  ;;  %v2156_v47 = vrot.slane %v2155_v25, 4  ;;  %v6494_v22 = vld [vmem:[%s6220_s27 + $0x64] sm:$0xf] }
  0x53   : > { %v431_v49 = vrot.slane %v429_v26, 5  ;;  %v426_v54 = vor.u32 %v425_v36, %v422_v37  ;;  %v435_v57 = vrot.slane %v433_v27, 4  ;;  %v2163_v41 = vshrl.u32 %v6471_v23, 16 }
  0x54   : > { %v441_v58 = vrot.slane %v439_v38, 5  ;;  %5386 = vmatprep.mubr.msk.bf16.mxu1 %vm685_vm3, %v4782_v43  ;;  %v2161_v63 = vsel %vm6246_vm4, %v2156_v47, %v2160_v12  ;;  %v2166_v2 = vshll.u32 %v6471_v23, 16  ;;  %v2172_v4 = vshll.u32 %v6476_v39, 16 }
  0x55   : > { %v2176_v17 = vshrl.u32 %v6476_v39, 16  ;;  %v4977_v9 = vcombine.low %v2151_v46, %v2161_v63  ;;  %v427_v11 = vrot.slane %v426_v54, 4  ;;  %v436_v14 = vor.u32 %v435_v57, %v431_v49  ;;  %v225_v54 = vld [vmem:[%s6220_s27 + $0x68] sm:$0x1] }
  0x56   : > { %v2165_v5 = vrot.slane %v2163_v41, 4  ;;  %v2168_v25 = vrot.slane %v2166_v2, 5  ;;  %v2174_v26 = vrot.slane %v2172_v4, 5  ;;  %v2182_v12 = vshll.u32 %v6481_v59, 16 }
  0x57   : > { %v2178_v27 = vrot.slane %v2176_v17, 4  ;;  %5522 = vmatprep.mubr.msk.bf16.mxu0 %vm685_vm3, %v4977_v9  ;;  %v432_v33 = vsel %vm6246_vm4, %v427_v11, %v431_v49  ;;  %v437_v37 = vrot.slane %v436_v14, 4  ;;  %v444_v36 = vshrl.u32 %v6491_v6, 16  ;;  %v6508_v49 = vld [vmem:[%s6220_s27 + $0x6c] sm:$0xf] }
  0x58   : > { %v447_v38 = vshll.u32 %v6491_v6, 16  ;;  %v2169_v43 = vor.u32 %v2168_v25, %v2165_v5  ;;  %v2184_v47 = vrot.slane %v2182_v12, 5  ;;  %v453_v57 = vshll.u32 %v6494_v22, 16 }
  0x59   : > { %v2179_v46 = vor.u32 %v2178_v27, %v2174_v26  ;;  %v442_v41 = vsel %vm6246_vm4, %v437_v37, %v441_v58  ;;  %v446_v63 = vrot.slane %v444_v36, 4  ;;  %v457_v4 = vshrl.u32 %v6494_v22, 16 }
  0x5a   : > { %v449_v2 = vrot.slane %v447_v38, 5  ;;  %v4783_v17 = vcombine.low %v432_v33, %v442_v41  ;;  %v2170_v9 = vrot.slane %v2169_v43, 4  ;;  %v455_v14 = vrot.slane %v453_v57, 5  ;;  %v6524_v38 = vld [vmem:[%s6220_s27 + $0x70] sm:$0xf] }
  0x5b   : > { %v2180_v11 = vrot.slane %v2179_v46, 4  ;;  %v459_v25 = vrot.slane %v457_v4, 4  ;;  %v463_v27 = vshll.u32 %v225_v54, 16  ;;  %v5003_v58 = vrot.slane %v6226_v13, 9  ;;  %v228_v13 = vld [vmem:[%s6220_s27 + $0x74] sm:$0x1] }
  0x5c   : > { %v450_v5 = vor.u32 %v449_v2, %v446_v63  ;;  %5387 = vmatmul.mubr.msk.bf16.gmra.mrb[12].mxu1 %vm685_vm3, %v4783_v17  ;;  %v2175_v33 = vsel %vm6246_vm4, %v2170_v9, %v2174_v26  ;;  %v2690_v36 = vrot.slane %v6229_v15, 5  ;;  %v468_v43 = vshrl.u32 %v6508_v49, 16 }
  0x5d   : > { %v2185_v37 = vsel %vm6246_vm4, %v2180_v11, %v2184_v47  ;;  %v460_v57 = vor.u32 %v459_v25, %v455_v14  ;;  %v465_v41 = vrot.slane %v463_v27, 5  ;;  %v471_v47 = vshll.u32 %v6508_v49, 16 }
  0x5e   : > { %v4978_v46 = vcombine.low %v2175_v33, %v2185_v37  ;;  %v451_v54 = vrot.slane %v450_v5, 4  ;;  %v2691_v63 = vsel %vm6512_vm7, %v5003_v58, %v2690_v36  ;;  %v2692_v2 = vrot.slane %v2690_v36, 4  ;;  %v6542_v58 = vld [vmem:[%s6220_s27 + $0x78] sm:$0xf] }
  0x5f   : > { %v470_v26 = vrot.slane %v468_v43, 4  ;;  %v461_v4 = vrot.slane %v460_v57, 4  ;;  %v477_v17 = vshll.u32 %v6524_v38, 16  ;;  %v481_v9 = vshrl.u32 %v6524_v38, 16  ;;  %v6547_v43 = vld [vmem:[%s6220_s27 + $0x7c] sm:$0xf] }
  0x60   : > { %5523 = vmatmul.mubr.msk.bf16.gmra.mrb[12].mxu0 %vm685_vm3, %v4978_v46  ;;  %v456_v15 = vsel %vm6246_vm4, %v451_v54, %v455_v14  ;;  %v2694_v11 = vsel %vm6512_vm7, %v2692_v2, %v2693_v62  ;;  %v473_v5 = vrot.slane %v471_v47, 5  ;;  %v487_v25 = vshll.u32 %v228_v13, 16  ;;  %v231_v46 = vld [vmem:[%s6220_s27 + $0x80] sm:$0x1] }
  0x61   : > { %v5004_v27 = vrot.slane %v6264_v55, 9  ;;  %v466_v33 = vsel %vm6246_vm4, %v461_v4, %v465_v41  ;;  %v5020_v14 = vcombine.low %v2691_v63, %v2694_v11  ;;  %v479_v37 = vrot.slane %v477_v17, 5 }
  0x62   : > { %v483_v36 = vrot.slane %v481_v9, 4  ;;  %v4784_v54 = vcombine.low %v456_v15, %v466_v33  ;;  %v474_v16 = vor.u32 %v473_v5, %v470_v26  ;;  %v489_v57 = vrot.slane %v487_v25, 5  ;;  %v6572_v33 = vld [vmem:[%s6220_s27 + $0x88] sm:$0xf] }
  0x63   : > { %v2698_v62 = vsel %vm6512_vm7, %v5004_v27, %v2697_v24  ;;  %5544 = vmatprep.mubr.msk.bf16.mxu0 %vm685_vm3, %v5020_v14  ;;  %v2699_v41 = vrot.slane %v2697_v24, 4  ;;  %v492_v13 = vshrl.u32 %v6542_v58, 16  ;;  %v495_v63 = vshll.u32 %v6542_v58, 16  ;;  %v6569_v27 = vld [vmem:[%s6220_s27 + $0x84] sm:$0xf] }
  0x64   : > { %v484_v55 = vor.u32 %v483_v36, %v479_v37  ;;  %5390 = vmatprep.mubr.msk.bf16.mxu1 %vm685_vm3, %v4784_v54  ;;  %v475_v2 = vrot.slane %v474_v16, 4  ;;  %v501_v26 = vshll.u32 %v6547_v43, 16  ;;  %v505_v47 = vshrl.u32 %v6547_v43, 16 }
  0x65   : > { %v511_v15 = vshll.u32 %v231_v46, 16  ;;  %v2701_v60 = vsel %vm6512_vm7, %v2699_v41, %v2700_v29  ;;  %v494_v24 = vrot.slane %v492_v13, 4  ;;  %v497_v17 = vrot.slane %v495_v63, 5  ;;  %v6580_v46 = vld [vmem:[%s8280_s1 + $0xe] sm:$0x3] }
  0x66   : > { %v485_v4 = vrot.slane %v484_v55, 4  ;;  %v480_v9 = vsel %vm6246_vm4, %v475_v2, %v479_v37  ;;  %v5021_v11 = vcombine.low %v2698_v62, %v2701_v60  ;;  %v503_v5 = vrot.slane %v501_v26, 5  ;;  %v234_v55 = vld [vmem:[%s6220_s27 + $0x8c] sm:$0x1] }
  0x67   : > { %v507_v25 = vrot.slane %v505_v47, 4  ;;  %v498_v0 = vor.u32 %v497_v17, %v494_v24  ;;  %v513_v36 = vrot.slane %v511_v15, 5  ;;  %v5005_v29 = vrot.slane %v6298_v30, 9 }
  0x68   : > { %v490_v14 = vsel %vm6246_vm4, %v485_v4, %v489_v57  ;;  %5545 = vmatmul.mubr.msk.bf16.vlgmr.msra.gmra.mrb[0].mxu0 %vm685_vm3, %v5021_v11  ;;  %v2704_v16 = vrot.slane %v6305_v45, 5  ;;  %v2707_v62 = vrot.slane %v6310_v52, 5  ;;  %v516_v41 = vshrl.u32 %v6569_v27, 16  ;;  %v6606_v11 = vld [vmem:[%s6220_s27 + $0x94] sm:$0xf] }
  0x69   : > { %v4785_v37 = vcombine.low %v480_v9, %v490_v14  ;;  %v508_v54 = vor.u32 %v507_v25, %v503_v5  ;;  %5577 = vmatpush3.bf16.msra.mxu0 %v6278_v1  ;;  %v499_v57 = vrot.slane %v498_v0, 4  ;;  %v519_v30 = vshll.u32 %v6569_v27, 16  ;;  %v6603_v9 = vld [vmem:[%s6220_s27 + $0x90] sm:$0xf] }
  0x6a   : > { %v525_v13 = vshll.u32 %v6572_v33, 16  ;;  %v2705_v45 = vsel %vm6512_vm7, %v5005_v29, %v2704_v16  ;;  %v2706_v2 = vrot.slane %v2704_v16, 4  ;;  %v529_v52 = vshrl.u32 %v6572_v33, 16  ;;  %5944 = vmatprep.subr.msk.bf16.mxu0 %vm734_vm0, %v6580_v46 }
  0x6b   : > { %5391 = vmatmul.mubr.msk.bf16.gmra.mrb[16].mxu1 %vm685_vm3, %v4785_v37  ;;  %v509_v63 = vrot.slane %v508_v54, 4  ;;  %v504_v1 = vsel %vm6246_vm4, %v499_v57, %v503_v5  ;;  %v518_v26 = vrot.slane %v516_v41, 4  ;;  %v521_v47 = vrot.slane %v519_v30, 5 }
  0x6c   : > { %v527_v15 = vrot.slane %v525_v13, 5  ;;  %v2708_v60 = vsel %vm6512_vm7, %v2706_v2, %v2707_v62  ;;  %v531_v24 = vrot.slane %v529_v52, 4  ;;  %v535_v17 = vshll.u32 %v234_v55, 16  ;;  %v6614_v62 = vld [vmem:[%s6220_s27 + $0x98] sm:$0x1] }
  0x6d   : > { %v514_v4 = vsel %vm6246_vm4, %v509_v63, %v513_v36  ;;  %v5022_v14 = vcombine.low %v2705_v45, %v2708_v60  ;;  %v522_v0 = vor.u32 %v521_v47, %v518_v26  ;;  %v5006_v5 = vrot.slane %v6328_v21, 9  ;;  %v6633_v60 = vld [vmem:[%s6220_s27 + $0xa0] sm:$0xf] }
  0x6e   : > { %v4786_v25 = vcombine.low %v504_v1, %v514_v4  ;;  %v532_v29 = vor.u32 %v531_v24, %v527_v15  ;;  %v537_v37 = vrot.slane %v535_v17, 5  ;;  %v2711_v54 = vrot.slane %v6334_v34, 5  ;;  %v6630_v4 = vld [vmem:[%s6220_s27 + $0x9c] sm:$0xf] }
  0x6f   : > { %v2714_v36 = vrot.slane %v6343_v42, 5  ;;  %5548 = vmatprep.mubr.msk.bf16.mxu0 %vm685_vm3, %v5022_v14  ;;  %v523_v16 = vrot.slane %v522_v0, 4  ;;  %v540_v57 = vshrl.u32 %v6603_v9, 16  ;;  %v543_v55 = vshll.u32 %v6603_v9, 16 }
  0x70   : > { %5394 = vmatprep.mubr.msk.bf16.mxu1 %vm685_vm3, %v4786_v25  ;;  %v549_v21 = vshll.u32 %v6606_v11, 16  ;;  %v533_v41 = vrot.slane %v532_v29, 4  ;;  %v2712_v34 = vsel %vm6512_vm7, %v5006_v5, %v2711_v54  ;;  %v2713_v42 = vrot.slane %v2711_v54, 4  ;;  %v240_v54 = vld [vmem:[%s6220_s27 + $0xa4] sm:$0x1] }
  0x71   : > { %v553_v30 = vshrl.u32 %v6606_v11, 16  ;;  %v528_v13 = vsel %vm6246_vm4, %v523_v16, %v527_v15  ;;  %v542_v63 = vrot.slane %v540_v57, 4  ;;  %v545_v45 = vrot.slane %v543_v55, 5 }
  0x72   : > { %v551_v2 = vrot.slane %v549_v21, 5  ;;  %v538_v52 = vsel %vm6246_vm4, %v533_v41, %v537_v37  ;;  %v2715_v1 = vsel %vm6512_vm7, %v2713_v42, %v2714_v36  ;;  %v559_v47 = vshll.u32 %v6614_v62, 16 }
  0x73   : > { %v555_v26 = vrot.slane %v553_v30, 4  ;;  %v4787_v24 = vcombine.low %v528_v13, %v538_v52  ;;  %v5023_v17 = vcombine.low %v2712_v34, %v2715_v1  ;;  %v546_v15 = vor.u32 %v545_v45, %v542_v63  ;;  %v6654_v52 = vld [vmem:[%s6220_s27 + $0xa8] sm:$0xf]  ;;  %v6657_v1 = vld [vmem:[%s6220_s27 + $0xac] sm:$0xf] }
  0x74   : > { %v5007_v25 = vrot.slane %v6365_v10, 9  ;;  %v561_v0 = vrot.slane %v559_v47, 5  ;;  %v2718_v5 = vrot.slane %v6371_v19, 5  ;;  %v2721_v29 = vrot.slane %v6376_v31, 5  ;;  %8310 = vst [vmem:[#allocation3_spill] sm:$0xff] %v6654_v52 }
  0x75   : > { %v556_v14 = vor.u32 %v555_v26, %v551_v2  ;;  %5395 = vmatmul.mubr.msk.bf16.gmra.mrb[20].mxu1 %vm685_vm3, %v4787_v24  ;;  %5549 = vmatmul.mubr.msk.bf16.gmra.mrb[4].mxu0 %vm685_vm3, %v5023_v17  ;;  %v547_v37 = vrot.slane %v546_v15, 4  ;;  %v564_v36 = vshrl.u32 %v6630_v4, 16  ;;  %v567_v16 = vshll.u32 %v6630_v4, 16 }
  0x76   : > { %v573_v10 = vshll.u32 %v6633_v60, 16  ;;  %v2719_v19 = vsel %vm6512_vm7, %v5007_v25, %v2718_v5  ;;  %v2720_v55 = vrot.slane %v2718_v5, 4  ;;  %v577_v31 = vshrl.u32 %v6633_v60, 16  ;;  %v6665_v5 = vld [vmem:[%s6220_s27 + $0xb0] sm:$0x1] }
  0x77   : > { %v557_v57 = vrot.slane %v556_v14, 4  ;;  %v552_v21 = vsel %vm6246_vm4, %v547_v37, %v551_v2  ;;  %v566_v41 = vrot.slane %v564_v36, 4  ;;  %v569_v34 = vrot.slane %v567_v16, 5  ;;  %8311 = vst [vmem:[#allocation4_spill] sm:$0xff] %v6665_v5 }
  0x78   : > { %v575_v42 = vrot.slane %v573_v10, 5  ;;  %v2722_v13 = vsel %vm6512_vm7, %v2720_v55, %v2721_v29  ;;  %v579_v63 = vrot.slane %v577_v31, 4  ;;  %v583_v45 = vshll.u32 %v240_v54, 16 }
  0x79   : > { %v562_v30 = vsel %vm6246_vm4, %v557_v57, %v561_v0  ;;  %v5024_v47 = vcombine.low %v2719_v19, %v2722_v13  ;;  %v570_v24 = vor.u32 %v569_v34, %v566_v41  ;;  %v5008_v2 = vrot.slane %v6403_v8, 9  ;;  %v6681_v34 = vld [vmem:[%s6220_s27 + $0xb4] sm:$0xf] }
  0x7a   : > { %v4788_v26 = vcombine.low %v552_v21, %v562_v30  ;;  %v580_v17 = vor.u32 %v579_v63, %v575_v42  ;;  %v585_v15 = vrot.slane %v583_v45, 5  ;;  %v2725_v25 = vrot.slane %v6406_v18, 5  ;;  %8312 = vst [vmem:[#allocation5_spill] sm:$0xff] %v6681_v34  ;;  %v6684_v30 = vld [vmem:[%s6220_s27 + $0xb8] sm:$0xf] }
  0x7b   : > { %v2728_v14 = vrot.slane %v6412_v28, 5  ;;  %5552 = vmatprep.mubr.msk.bf16.mxu0 %vm685_vm3, %v5024_v47  ;;  %v571_v0 = vrot.slane %v570_v24, 4  ;;  %v588_v29 = vshrl.u32 %v6654_v52, 16  ;;  %v591_v37 = vshll.u32 %v6654_v52, 16  ;;  %8313 = vst [vmem:[#allocation6_spill] sm:$0xff] %v6684_v30 }
  0x7c   : > { %5398 = vmatprep.mubr.msk.bf16.mxu1 %vm685_vm3, %v4788_v26  ;;  %v597_v8 = vshll.u32 %v6657_v1, 16  ;;  %v581_v54 = vrot.slane %v580_v17, 4  ;;  %v2726_v18 = vsel %vm6512_vm7, %v5008_v2, %v2725_v25  ;;  %v2727_v28 = vrot.slane %v2725_v25, 4 }
  0x7d   : > { %v601_v36 = vshrl.u32 %v6657_v1, 16  ;;  %v576_v16 = vsel %vm6246_vm4, %v571_v0, %v575_v42  ;;  %v590_v10 = vrot.slane %v588_v29, 4  ;;  %v593_v57 = vrot.slane %v591_v37, 5 }
  0x7e   : > { %v599_v19 = vrot.slane %v597_v8, 5  ;;  %v586_v55 = vsel %vm6246_vm4, %v581_v54, %v585_v15  ;;  %v2729_v31 = vsel %vm6512_vm7, %v2727_v28, %v2728_v14  ;;  %v607_v41 = vshll.u32 %v6665_v5, 16  ;;  %v6692_v15 = vld [vmem:[%s6220_s27 + $0xbc] sm:$0x1]  ;;  %v4913_v28 = vld [vmem:[%s6220_s27 + $0x6c] sm:$0xf] }
  0x7f   : > { %v603_v21 = vrot.slane %v601_v36, 4  ;;  %v4789_v13 = vcombine.low %v576_v16, %v586_v55  ;;  %v5025_v63 = vcombine.low %v2726_v18, %v2729_v31  ;;  %v594_v42 = vor.u32 %v593_v57, %v590_v10  ;;  %8314 = vst [vmem:[#allocation7_spill] sm:$0xff] %v6692_v15  ;;  %v4914_v55 = vld [vmem:[%s6220_s27 + $0x70] sm:$0xf]  ;;  %v4915_v31 = vld [vmem:[%s6220_s27 + $0x74] sm:$0x1] }
  0x80   : > { %v5009_v45 = vrot.slane %v6437_v7, 9  ;;  %v609_v47 = vrot.slane %v607_v41, 5  ;;  %v2732_v24 = vrot.slane %v6440_v20, 5  ;;  %v2735_v2 = vrot.slane %v6447_v35, 5  ;;  %v6044_v5 = vld [vmem:[%s6220_s27 + $0x64] sm:$0xf] }
  0x81   : > { %v604_v26 = vor.u32 %v603_v21, %v599_v19  ;;  %5399 = vmatmul.mubr.msk.bf16.gmra.mrb[24].mxu1 %vm685_vm3, %v4789_v13  ;;  %5553 = vmatmul.mubr.msk.bf16.gmra.mrb[8].mxu0 %vm685_vm3, %v5025_v63  ;;  %v595_v17 = vrot.slane %v594_v42, 4  ;;  %v612_v25 = vshrl.u32 %v6681_v34, 16  ;;  %v615_v14 = vshll.u32 %v6681_v34, 16 }
  0x82   : > { %v621_v7 = vshll.u32 %v6684_v30, 16  ;;  %v2733_v20 = vsel %vm6512_vm7, %v5009_v45, %v2732_v24  ;;  %v2734_v35 = vrot.slane %v2732_v24, 4  ;;  %v625_v29 = vshrl.u32 %v6684_v30, 16 }
  0x83   : > { %v605_v0 = vrot.slane %v604_v26, 4  ;;  %v600_v37 = vsel %vm6246_vm4, %v595_v17, %v599_v19  ;;  %v614_v8 = vrot.slane %v612_v25, 4  ;;  %v617_v54 = vrot.slane %v615_v14, 5 }
  0x84   : > { %v623_v18 = vrot.slane %v621_v7, 5  ;;  %v2736_v16 = vsel %vm6512_vm7, %v2734_v35, %v2735_v2  ;;  %v627_v10 = vrot.slane %v625_v29, 4  ;;  %v631_v57 = vshll.u32 %v6692_v15, 16  ;;  %v6726_v35 = vld [vmem:[%s6220_s27] sm:$0xf] }
  0x85   : > { %v610_v36 = vsel %vm6246_vm4, %v605_v0, %v609_v47  ;;  %v5026_v41 = vcombine.low %v2733_v20, %v2736_v16  ;;  %v618_v13 = vor.u32 %v617_v54, %v614_v8  ;;  %v5010_v19 = vrot.slane %v6471_v23, 9  ;;  %v6729_v29 = vld [vmem:[%s6220_s27 + $0x4] sm:$0xf]  ;;  %v4916_v8 = vld [vmem:[%s6220_s27 + $0x78] sm:$0xf] }
  0x86   : > { %v4790_v21 = vcombine.low %v600_v37, %v610_v36  ;;  %v628_v63 = vor.u32 %v627_v10, %v623_v18  ;;  %v633_v42 = vrot.slane %v631_v57, 5  ;;  %v2739_v45 = vrot.slane %v6476_v39, 5  ;;  %v4917_v54 = vld [vmem:[%s6220_s27 + $0x7c] sm:$0xf]  ;;  %v4918_v16 = vld [vmem:[%s6220_s27 + $0x80] sm:$0x1] }
  0x87   : > { %v2742_v26 = vrot.slane %v6481_v59, 5  ;;  %5556 = vmatprep.mubr.msk.bf16.mxu0 %vm685_vm3, %v5026_v41  ;;  %v619_v47 = vrot.slane %v618_v13, 4  ;;  %v5011_v24 = vrot.slane %v4913_v28, 9  ;;  %v2746_v2 = vrot.slane %v4914_v55, 5  ;;  %v4919_v10 = vld [vmem:[%s6220_s27 + $0x84] sm:$0xf] }
  0x88   : > { %5402 = vmatprep.mubr.msk.bf16.mxu1 %vm685_vm3, %v4790_v21  ;;  %v2749_v17 = vrot.slane %v4915_v31, 5  ;;  %v629_v25 = vrot.slane %v628_v63, 4  ;;  %v2740_v23 = vsel %vm6512_vm7, %v5010_v19, %v2739_v45  ;;  %v2741_v39 = vrot.slane %v2739_v45, 4  ;;  %v4920_v55 = vld [vmem:[%s6220_s27 + $0x88] sm:$0xf] }
  0x89   : > { %v624_v59 = vsel %vm6246_vm4, %v619_v47, %v623_v18  ;;  %v2747_v14 = vsel %vm6512_vm7, %v5011_v24, %v2746_v2  ;;  %v2748_v7 = vrot.slane %v2746_v2, 4  ;;  %v4808_v37 = vcombine.low %v6726_v35, %v6729_v29  ;;  %v4921_v41 = vld [vmem:[%s6220_s27 + $0x8c] sm:$0x1]  ;;  %v4923_v13 = vld [vmem:[%s6220_s27 + $0x94] sm:$0xf] }
  0x8a   : > { %v634_v0 = vsel %vm6246_vm4, %v629_v25, %v633_v42  ;;  %v2743_v20 = vsel %vm6512_vm7, %v2741_v39, %v2742_v26  ;;  %v5012_v31 = vrot.slane %v4916_v8, 9  ;;  %v2753_v21 = vrot.slane %v4917_v54, 5  ;;  %v4922_v42 = vld [vmem:[%s6220_s27 + $0x90] sm:$0xf]  ;;  %v4924_v45 = vld [vmem:[%s6220_s27 + $0x98] sm:$0x1] }
  0x8b   : > { %v4791_v18 = vcombine.low %v624_v59, %v634_v0  ;;  %v5027_v28 = vcombine.low %v2740_v23, %v2743_v20  ;;  %v2750_v36 = vsel %vm6512_vm7, %v2748_v7, %v2749_v17  ;;  %v2756_v19 = vrot.slane %v4918_v16, 5  ;;  %v4925_v2 = vld [vmem:[%s6220_s27 + $0x9c] sm:$0xf]  ;;  %v4926_v17 = vld [vmem:[%s6220_s27 + $0xa0] sm:$0xf] }
  0x8c   : > { %v5028_v57 = vcombine.low %v2747_v14, %v2750_v36  ;;  %v5013_v63 = vrot.slane %v4919_v10, 9  ;;  %v2754_v26 = vsel %vm6512_vm7, %v5012_v31, %v2753_v21  ;;  %v2755_v47 = vrot.slane %v2753_v21, 4  ;;  %v6753_v25 = vld [vmem:[%s6220_s27 + $0xc] sm:$0xf]  ;;  %v6756_v23 = vld [vmem:[%s6220_s27 + $0x10] sm:$0xf] }
  0x8d   : > { %5403 = vmatmul.mubr.msk.bf16.gmra.mrb[28].mxu1 %vm685_vm3, %v4791_v18  ;;  %5557 = vmatmul.mubr.msk.bf16.gmra.mrb[12].mxu0 %vm685_vm3, %v5027_v28  ;;  %v2760_v24 = vrot.slane %v4920_v55, 5  ;;  %v4809_v39 = vcombine.low %v6753_v25, %v6756_v23  ;;  %v6023_v59 = vld [vmem:[%s8280_s1 + $0x4] sm:$0x3]  ;;  %v2763_v7 = vrot.slane %v4921_v41, 5  ;;  %v2767_v0 = vrot.slane %v4923_v13, 5 }
  0x8e   : > { %5408 = vmatprep.mubr.msk.bf16.mxu1 %vm685_vm3, %v4808_v37  ;;  %5560 = vmatprep.mubr.msk.bf16.mxu0 %vm685_vm3, %v5028_v57  ;;  %v1421_v14 = vsel %vm734_vm0, %v6023_v59, 0  ;;  %v4927_v20 = vld [vmem:[%s6220_s27 + $0xa4] sm:$0x1]  ;;  %v2757_v37 = vsel %vm6512_vm7, %v2755_v47, %v2756_v19  ;;  %v6768_v8 = vld [vmem:[%s6220_s27 + $0x18] sm:$0xf]  ;;  %v5014_v10 = vrot.slane %v4922_v42, 9 }
  0x8f   : > { %v6771_v54 = vld [vmem:[%s6220_s27 + $0x1c] sm:$0xf]  ;;  %v2761_v28 = vsel %vm6512_vm7, %v5013_v63, %v2760_v24  ;;  %v2762_v36 = vrot.slane %v2760_v24, 4  ;;  %v5029_v16 = vcombine.low %v2754_v26, %v2757_v37  ;;  %v2769_v57 = vrot.slane %v2767_v0, 4  ;;  %v4929_v19 = vld [vmem:[%s6220_s27 + $0xac] sm:$0xf] }
  0x90   : > { %v4810_v18 = vcombine.low %v6768_v8, %v6771_v54  ;;  %v2770_v55 = vrot.slane %v4924_v45, 5  ;;  %v5015_v21 = vrot.slane %v4925_v2, 9  ;;  %v2774_v41 = vrot.slane %v4926_v17, 5  ;;  %v4932_v59 = vld [vmem:[%s6220_s27 + $0xb8] sm:$0xf] }
  0x91   : > { %v2764_v31 = vsel %vm6512_vm7, %v2762_v36, %v2763_v7  ;;  %v2777_v13 = vrot.slane %v4927_v20, 5  ;;  %v6784_v63 = vld [vmem:[%s8280_s1 + $0x6] sm:$0x3]  ;;  %v2768_v45 = vsel %vm6512_vm7, %v5014_v10, %v2767_v0  ;;  %v2781_v24 = vrot.slane %v4929_v19, 5  ;;  %v4930_v7 = vld [vmem:[%s6220_s27 + $0xb0] sm:$0x1] }
  0x92   : > { %v5030_v47 = vcombine.low %v2761_v28, %v2764_v31  ;;  %v2776_v42 = vrot.slane %v2774_v41, 4  ;;  %v2771_v26 = vsel %vm6512_vm7, %v2769_v57, %v2770_v55  ;;  %v2775_v2 = vsel %vm6512_vm7, %v5015_v21, %v2774_v41  ;;  %v4931_v0 = vld [vmem:[%s6220_s27 + $0xb4] sm:$0xf]  ;;  %v4933_v20 = vld [vmem:[%s6220_s27 + $0xbc] sm:$0x1] }
  0x93   : > { %v6805_v37 = vld [vmem:[%s6220_s27 + $0x24] sm:$0xf]  ;;  %v5031_v36 = vcombine.low %v2768_v45, %v2771_v26  ;;  %v2783_v55 = vrot.slane %v2781_v24, 4  ;;  %v2784_v31 = vrot.slane %v4930_v7, 5  ;;  %v5017_v21 = vrot.slane %v4931_v0, 9 }
  0x94   : > { %v2778_v17 = vsel %vm6512_vm7, %v2776_v42, %v2777_v13  ;;  %v2791_v13 = vrot.slane %v4933_v20, 5  ;;  %v4935_v19 = vld [vmem:[%s6220_s27 + $0xc4] sm:$0xf]  ;;  %v4934_v45 = vld [vmem:[%s6220_s27 + $0xc0] sm:$0xf] }
  0x95   : > { %5409 = vmatmul.mubr.msk.bf16.vlgmr.msra.gmra.mrb[0].mxu1 %vm685_vm3, %v4809_v39  ;;  %5561 = vmatmul.mubr.msk.bf16.gmra.mrb[16].mxu0 %vm685_vm3, %v5029_v16  ;;  %v4928_v39 = vld [vmem:[%s6220_s27 + $0xa8] sm:$0xf]  ;;  %v4812_v16 = vcombine.low %v6347_v44, %v6353_v56  ;;  %v5032_v10 = vcombine.low %v2775_v2, %v2778_v17  ;;  %v2785_v56 = vsel %vm6512_vm7, %v2783_v55, %v2784_v31  ;;  %v5018_v7 = vrot.slane %v4934_v45, 9 }
  0x96   : > { %5441 = vmatpush3.bf16.msra.mxu1 %v1421_v14  ;;  %5412 = vmatprep.mubr.msk.bf16.mxu1 %vm685_vm3, %v4810_v18  ;;  %v2788_v14 = vrot.slane %v4932_v59, 5  ;;  %v6808_v18 = vld [vmem:[%s6220_s27 + $0x28] sm:$0xf]  ;;  %v5016_v57 = vrot.slane %v4928_v39, 9  ;;  %v4813_v2 = vcombine.low %v6384_v50, %v6390_v51  ;;  %v4818_v55 = vcombine.low %v6542_v58, %v6547_v43  ;;  %v6891_v58 = vld [vmem:[%s6220_s27 + $0x40] sm:$0xf] }
  0x97   : > { %5564 = vmatprep.mubr.msk.bf16.mxu0 %vm685_vm3, %v5030_v47  ;;  %5939 = vmatprep.subr.msk.bf16.mxu1 %vm734_vm0, %v6784_v63  ;;  %v4811_v28 = vcombine.low %v6805_v37, %v6808_v18  ;;  %v2795_v47 = vrot.slane %v4935_v19, 5  ;;  %v4936_v26 = vld [vmem:[%s6220_s27 + $0xc8] sm:$0x1]  ;;  %v3955_v31 = vsel %vm734_vm0, %v6580_v46, 0  ;;  %v4819_v45 = vcombine.low %v6569_v27, %v6572_v33 }
  0x98   : > { %v2790_v41 = vrot.slane %v2788_v14, 4  ;;  %v2782_v44 = vsel %vm6512_vm7, %v5016_v57, %v2781_v24  ;;  %v2789_v59 = vsel %vm6512_vm7, %v5017_v21, %v2788_v14  ;;  %v4814_v24 = vcombine.low %v6420_v40, %v6423_v48  ;;  %v6842_v40 = vld [vmem:[%s6220_s27 + $0x18] sm:$0xf]  ;;  %v6845_v48 = vld [vmem:[%s6220_s27 + $0x1c] sm:$0xf] }
  0x99   : > { %v5033_v17 = vcombine.low %v2782_v44, %v2785_v56  ;;  %v2797_v0 = vrot.slane %v2795_v47, 4  ;;  %v2798_v20 = vrot.slane %v4936_v26, 5  ;;  %v2796_v50 = vsel %vm6512_vm7, %v5018_v7, %v2795_v47  ;;  %v6895_v46 = vld [vmem:[%s6220_s27 + $0x48] sm:$0xf]  ;;  %v6908_v47 = vld [vmem:[%s6220_s27 + $0x14] sm:$0x1] }
  0x9a   : > { %v2792_v42 = vsel %vm6512_vm7, %v2790_v41, %v2791_v13  ;;  %v4815_v14 = vcombine.low %v6454_v53, %v6460_v61  ;;  %v6861_v53 = vld [vmem:[%s6220_s27 + $0x28] sm:$0xf]  ;;  %v6864_v61 = vld [vmem:[%s6220_s27 + $0x30] sm:$0xf]  ;;  %v6898_v13 = vld [vmem:[%s6220_s27 + $0x4c] sm:$0xf] }
  0x9b   : > { %v5034_v39 = vcombine.low %v2789_v59, %v2792_v42  ;;  %v2799_v51 = vsel %vm6512_vm7, %v2797_v0, %v2798_v20  ;;  %v6882_v41 = vld [vmem:[%s8280_s1 + $0x10] sm:$0x3]  ;;  %v6903_v19 = vld [vmem:[%s6220_s27 + $0x8] sm:$0x1]  ;;  %v1219_v56 = vrot.slane %v6756_v23, 5  ;;  %v1222_v59 = vrot.slane %v6908_v47, 5 }
  0x9c   : > { %v1215_v44 = vrot.slane %v6903_v19, 5  ;;  %v4820_v23 = vcombine.low %v6603_v9, %v6606_v11  ;;  %v6926_v7 = vld [vmem:[%s6220_s27 + $0x58] sm:$0xf]  ;;  %v1226_v9 = vrot.slane %v6771_v54, 5  ;;  %v6995_v33 = vld [vmem:[%s6220_s27 + $0x88] sm:$0xf] }
  0x9d   : > { %5413 = vmatmul.mubr.msk.bf16.gmra.mrb[4].mxu1 %vm685_vm3, %v4811_v28  ;;  %5565 = vmatmul.mubr.msk.bf16.gmra.mrb[20].mxu0 %vm685_vm3, %v5031_v36  ;;  %v5035_v28 = vcombine.low %v2796_v50, %v2799_v51  ;;  %v4816_v36 = vcombine.low %v6491_v6, %v6494_v22  ;;  %v6867_v6 = vld [vmem:[%s6220_s27 + $0x34] sm:$0xf]  ;;  %v4817_v22 = vcombine.low %v6508_v49, %v6524_v38  ;;  %v6888_v49 = vld [vmem:[%s6220_s27 + $0x3c] sm:$0xf]  ;;  %v6933_v50 = vld [vmem:[%s6220_s27 + $0x60] sm:$0xf] }
  0x9e   : > { %5416 = vmatprep.mubr.msk.bf16.mxu1 %vm685_vm3, %v4812_v16  ;;  %5568 = vmatprep.mubr.msk.bf16.mxu0 %vm685_vm3, %v5032_v10  ;;  %v5101_v16 = vcombine.low %v6842_v40, %v6845_v48  ;;  %v6858_v10 = vld [vmem:[%s6220_s27 + $0x24] sm:$0xf]  ;;  %v5103_v21 = vcombine.low %v6864_v61, %v6867_v6  ;;  %v5104_v26 = vcombine.low %v6888_v49, %v6891_v58  ;;  %v4842_v27 = vrot.slane %v6768_v8, 9  ;;  %v7019_v0 = vld [vmem:[%s6220_s27 + $0x94] sm:$0xf] }
  0x9f   : > { %v5102_v57 = vcombine.low %v6858_v10, %v6861_v53  ;;  %8315 = vst [vmem:[#allocation8_spill] sm:$0xff] %v6933_v50  ;;  %v4823_v51 = vcombine.low %v6681_v34, %v6684_v30  ;;  %v7027_v19 = vsel %vm734_vm0, %v6784_v63, 0  ;;  %v7045_v8 = vld [vmem:[%s6220_s27 + $0x9c] sm:$0xf]  ;;  %v7057_v54 = vld [vmem:[%s6220_s27 + $0xa8] sm:$0xf] }
  0xa0   : > { %v6035_v42 = vld [vmem:[%s6220_s27 + $0x40] sm:$0xf]  ;;  %v7126_v34 = vld [vmem:[%s6220_s27 + $0xc4] sm:$0xf] }
  0xa5   : > { %5417 = vmatmul.mubr.msk.bf16.gmra.mrb[8].mxu1 %vm685_vm3, %v4813_v2  ;;  %5569 = vmatmul.mubr.msk.bf16.gmra.mrb[24].mxu0 %vm685_vm3, %v5033_v17  ;;  %v7009_v17 = vld [vmem:[%s6220_s27 + $0x90] sm:$0xf]  ;;  %v7062_v2 = vld [vmem:[%s6220_s27 + $0xac] sm:$0xf] }
  0xa6   : > { %5420 = vmatprep.mubr.msk.bf16.mxu1 %vm685_vm3, %v4814_v24  ;;  %5572 = vmatprep.mubr.msk.bf16.mxu0 %vm685_vm3, %v5034_v39  ;;  %v5105_v24 = vcombine.low %v6895_v46, %v6898_v13  ;;  %v6923_v39 = vld [vmem:[%s6220_s27 + $0x54] sm:$0xf]  ;;  %8321 = vst [vmem:[#allocation14_spill] sm:$0xff] %v7009_v17 }
  0xa7   : > { %v5106_v47 = vcombine.low %v6923_v39, %v6926_v7 }
  0xad   : > { %5421 = vmatmul.mubr.msk.bf16.gmra.mrb[12].mxu1 %vm685_vm3, %v4815_v14  ;;  %5573 = vmatmul.mubr.msk.bf16.gmra.mrb[28].mxu0 %vm685_vm3, %v5035_v28  ;;  %v1247_v28 = vrot.slane %v6035_v42, 5  ;;  %v6036_v42 = vld [vmem:[%s6220_s27 + $0x4c] sm:$0xf] }
  0xae   : > { %5424 = vmatprep.mubr.msk.bf16.mxu1 %vm685_vm3, %v4816_v36  ;;  %5578 = vmatprep.mubr.msk.bf16.mxu0 %vm685_vm3, %v5101_v16  ;;  %v6940_v36 = vld [vmem:[%s6220_s27 + $0x64] sm:$0xf] }
  0xb5   : > { %5425 = vmatmul.mubr.msk.bf16.gmra.mrb[16].mxu1 %vm685_vm3, %v4817_v22  ;;  %5579 = vmatmul.mubr.msk.bf16.vlgmr.msra.gmra.mrb[0].mxu0 %vm685_vm3, %v5102_v57  ;;  %v6974_v22 = vld [vmem:[%s6220_s27 + $0x7c] sm:$0xf]  ;;  %v1221_v57 = vrot.slane %v1219_v56, 4 }
  0xb6   : > { %5611 = vmatpush3.bf16.msra.mxu0 %v3955_v31  ;;  %5428 = vmatprep.mubr.msk.bf16.mxu1 %vm685_vm3, %v4818_v55  ;;  %v1212_v55 = vrot.slane %v6729_v29, 5  ;;  %v6966_v31 = vld [vmem:[%s6220_s27 + $0x70] sm:$0xf]  ;;  %8319 = vst [vmem:[#allocation12_spill] sm:$0xff] %v6974_v22  ;;  %v4841_v29 = vrot.slane %v6753_v25, 9 }
  0xb7   : > { %5582 = vmatprep.mubr.msk.bf16.mxu0 %vm685_vm3, %v5103_v21  ;;  %5945 = vmatprep.subr.msk.bf16.mxu0 %vm734_vm0, %v6882_v41  ;;  %v4821_v21 = vcombine.low %v6630_v4, %v6633_v60  ;;  %8317 = vst [vmem:[#allocation10_spill] sm:$0xff] %v6966_v31  ;;  %v6969_v4 = vld [vmem:[%s6220_s27 + $0x78] sm:$0xf]  ;;  %v6987_v25 = vld [vmem:[%s6220_s27 + $0x84] sm:$0xf]  ;;  %v7005_v16 = vsel %vm6512_vm7, %v1221_v57, %v1222_v59  ;;  %v1233_v59 = vrot.slane %v6808_v18, 5 }
  0xb8   : > { %8318 = vst [vmem:[#allocation11_spill] sm:$0xff] %v6969_v4  ;;  %v1214_v14 = vrot.slane %v1212_v55, 4  ;;  %8320 = vst [vmem:[#allocation13_spill] sm:$0xff] %v6987_v25  ;;  %v7001_v20 = vsel %vm6512_vm7, %v4841_v29, %v1219_v56  ;;  %v1228_v56 = vrot.slane %v1226_v9, 4  ;;  %v6034_v18 = vld [vmem:[%s6220_s27 + $0x38] sm:$0x1] }
  0xbd   : > { %5429 = vmatmul.mubr.msk.bf16.gmra.mrb[20].mxu1 %vm685_vm3, %v4819_v45  ;;  %5583 = vmatmul.mubr.msk.bf16.gmra.mrb[4].mxu0 %vm685_vm3, %v5104_v26  ;;  %v6957_v26 = vld [vmem:[%s6220_s27 + $0x6c] sm:$0xf]  ;;  %v4840_v45 = vrot.slane %v6726_v35, 9 }
  0xbe   : > { %5432 = vmatprep.mubr.msk.bf16.mxu1 %vm685_vm3, %v4820_v23  ;;  %5586 = vmatprep.mubr.msk.bf16.mxu0 %vm685_vm3, %v5105_v24  ;;  %8316 = vst [vmem:[#allocation9_spill] sm:$0xff] %v6957_v26  ;;  %v4822_v23 = vcombine.low %v6654_v52, %v6657_v1  ;;  %v5107_v24 = vcombine.low %v6933_v50, %v6940_v36  ;;  %v8324_v52 = vshll.u32 %v6842_v40, 16 }
  0xbf   : > { %v5108_v35 = vcombine.low %v6957_v26, %v6966_v31  ;;  %v1213_v60 = vsel %vm6512_vm7, %v4840_v45, %v1212_v55  ;;  %v1216_v55 = vsel %vm6512_vm7, %v1214_v14, %v1215_v44  ;;  %v6030_v45 = vld [vmem:[%s6220_s27 + $0x20] sm:$0x1]  ;;  %v6031_v14 = vld [vmem:[%s6220_s27 + $0x34] sm:$0xf]  ;;  %v1268_v31 = vrot.slane %v6044_v5, 5 }
  0xc0   : > { %v1229_v29 = vrot.slane %v6030_v45, 5  ;;  %v1240_v57 = vrot.slane %v6031_v14, 5  ;;  %v4857_v63 = vcombine.low %v1213_v60, %v1216_v55  ;;  %v4843_v14 = vrot.slane %v6805_v37, 9  ;;  %v6032_v55 = vld [vmem:[%s6220_s27 + $0x2c] sm:$0x1] }
  0xc1   : > { %v1235_v60 = vrot.slane %v1233_v59, 4  ;;  %v1243_v37 = vrot.slane %v6034_v18, 5  ;;  %v6039_v45 = vld [vmem:[%s6220_s27 + $0x58] sm:$0xf]  ;;  %v6042_v26 = vld [vmem:[%s6220_s27 + $0x54] sm:$0xf] }
  0xc2   : > { %v1242_v44 = vrot.slane %v1240_v57, 4  ;;  %v7074_v18 = vsel %vm6512_vm7, %v4843_v14, %v1233_v59  ;;  %v7091_v14 = vld [vmem:[%s6220_s27 + $0xb4] sm:$0xf]  ;;  %v4847_v30 = vrot.slane %v6042_v26, 9  ;;  %v8325_v5 = vshrl.u32 %v6845_v48, 16 }
  0xc5   : > { %5433 = vmatmul.mubr.msk.bf16.gmra.mrb[24].mxu1 %vm685_vm3, %v4821_v21  ;;  %5587 = vmatmul.mubr.msk.bf16.gmra.mrb[8].mxu0 %vm685_vm3, %v5106_v47  ;;  %v7048_v21 = vld [vmem:[%s6220_s27 + $0xa0] sm:$0xf]  ;;  %v1236_v47 = vrot.slane %v6032_v55, 5 }
  0xc6   : > { %5436 = vmatprep.mubr.msk.bf16.mxu1 %vm685_vm3, %v4822_v23  ;;  %5590 = vmatprep.mubr.msk.bf16.mxu0 %vm685_vm3, %v5107_v24  ;;  %v7039_v24 = vsel %vm6512_vm7, %v4842_v27, %v1226_v9  ;;  %v7052_v23 = vsel %vm6512_vm7, %v1228_v56, %v1229_v29  ;;  %v6033_v27 = vld [vmem:[%s6220_s27 + $0x30] sm:$0xf]  ;;  %v6038_v56 = vld [vmem:[%s6220_s27 + $0x44] sm:$0x1] }
  0xc7   : > { %v4844_v9 = vrot.slane %v6033_v27, 9  ;;  %v7082_v27 = vsel %vm6512_vm7, %v1235_v60, %v1236_v47  ;;  %v6037_v47 = vld [vmem:[%s6220_s27 + $0x3c] sm:$0xf]  ;;  %v1250_v59 = vrot.slane %v6038_v56, 5  ;;  %v7118_v56 = vld [vmem:[%s6220_s27 + $0xc0] sm:$0xf] }
  0xc8   : > { %v4845_v60 = vrot.slane %v6037_v47, 9  ;;  %v6040_v47 = vld [vmem:[%s6220_s27 + $0x48] sm:$0xf] }
  0xc9   : > { %v7086_v29 = vsel %vm6512_vm7, %v4844_v9, %v1240_v57  ;;  %v7104_v57 = vsel %vm6512_vm7, %v1242_v44, %v1243_v37  ;;  %v1249_v9 = vrot.slane %v1247_v28, 4  ;;  %v4846_v15 = vrot.slane %v6040_v47, 9 }
  0xca   : > { %v7130_v37 = vsel %vm6512_vm7, %v4845_v60, %v1247_v28  ;;  %v3478_v28 = vrot.slane %v8324_v52, 5  ;;  %v8327_v52 = vcombine.low %v6987_v25, %v6995_v33 }
  0xcb   : > { %v7134_v47 = vsel %vm6512_vm7, %v1249_v9, %v1250_v59  ;;  %v7150_v59 = vld [vmem:[%s6220_s27 + $0xcc] sm:$0xf]  ;;  %v3488_v9 = vrot.slane %v8325_v5, 4 }
  0xcd   : > { %5437 = vmatmul.mubr.msk.bf16.gmra.mrb[28].mxu1 %vm685_vm3, %v4823_v51  ;;  %5591 = vmatmul.mubr.msk.bf16.gmra.mrb[12].mxu0 %vm685_vm3, %v5108_v35  ;;  %v1254_v51 = vrot.slane %v6036_v42, 5  ;;  %v8322_v35 = vcombine.low %v6969_v4, %v6974_v22  ;;  %v3482_v42 = vshll.u32 %v6845_v48, 16  ;;  %v6041_v4 = vld [vmem:[%s6220_s27 + $0x50] sm:$0x1]  ;;  %v6043_v22 = vld [vmem:[%s6220_s27 + $0x5c] sm:$0x1] }
  0xce   : > { %5442 = vmatprep.mubr.msk.bf16.mxu1 %vm685_vm3, %v4857_v63  ;;  %v1257_v44 = vrot.slane %v6041_v4, 5  ;;  %v1264_v55 = vrot.slane %v6043_v22, 5  ;;  %v8323_v4 = vshrl.u32 %v6842_v40, 16  ;;  %v7171_v48 = vld [vmem:[%s6220_s27 + $0xd0] sm:$0xf] }
  0xcf   : > { %5594 = vmatprep.mubr.msk.bf16.mxu0 %vm685_vm3, %v8322_v35  ;;  %v1261_v35 = vrot.slane %v6039_v45, 5  ;;  %v1256_v45 = vrot.slane %v1254_v51, 4  ;;  %v7145_v60 = vsel %vm6512_vm7, %v4846_v15, %v1254_v51  ;;  %v7152_v22 = vrot.slane %v3482_v42, 5  ;;  %v7174_v51 = vld [vmem:[%s6220_s27 + $0x20] sm:$0x1] }
  0xd0   : > { %v3475_v50 = vrot.slane %v8323_v4, 4  ;;  %v8326_v4 = vcombine.low %v7001_v20, %v7005_v16  ;;  %8328 = vst [vmem:[#allocation15_spill] sm:$0xff] %v7174_v51  ;;  %v1275_v20 = vrot.slane %v6524_v38, 5  ;;  %v3506_v16 = vshll.u32 %v6861_v53, 16  ;;  %v6049_v15 = vld [vmem:[%s6220_s27 + $0x74] sm:$0x1] }
  0xd1   : > { %v1263_v63 = vrot.slane %v1261_v35, 4  ;;  %v7168_v40 = vsel %vm6512_vm7, %v1256_v45, %v1257_v44  ;;  %v8329_v42 = vcombine.low %v7039_v24, %v7052_v23  ;;  %v7185_v5 = vsel %vm6512_vm7, %v4847_v30, %v1261_v35  ;;  %v6045_v44 = vld [vmem:[%s6220_s27 + $0x60] sm:$0xf]  ;;  %v6046_v24 = vld [vmem:[%s6220_s27 + $0x68] sm:$0x1] }
  0xd2   : > { %v4848_v45 = vrot.slane %v6045_v44, 9  ;;  %v8331_v38 = vshll.u32 %v6858_v10, 16  ;;  %v1270_v23 = vrot.slane %v1268_v31, 4  ;;  %v1271_v35 = vrot.slane %v6046_v24, 5  ;;  %v7212_v24 = vld [vmem:[%s6220_s27 + $0x2c] sm:$0x1] }
  0xd3   : > { %v7198_v30 = vsel %vm6512_vm7, %v1263_v63, %v1264_v55  ;;  %v1277_v63 = vrot.slane %v1275_v20, 4 }
  0xd4   : > { %v3502_v26 = vrot.slane %v8331_v38, 5  ;;  %v3492_v38 = vshll.u32 %v7174_v51, 16  ;;  %v1282_v51 = vrot.slane %v6547_v43, 5 }
  0xd5   : > { %5443 = vmatmul.mubr.msk.bf16.vlgmr.msra.gmra.mrb[0].mxu1 %vm685_vm3, %v8326_v4  ;;  %5595 = vmatmul.mubr.msk.bf16.gmra.mrb[16].mxu0 %vm685_vm3, %v8327_v52  ;;  %v8330_v4 = vshrl.u32 %v6858_v10, 16  ;;  %v6047_v10 = vld [vmem:[%s8280_s1 + $0x8] sm:$0x3] }
  0xd6   : > { %5475 = vmatpush3.bf16.msra.mxu1 %v7027_v19  ;;  %5446 = vmatprep.mubr.msk.bf16.mxu1 %vm685_vm3, %v8329_v42  ;;  %v8332_v19 = vcombine.low %v7009_v17, %v7019_v0  ;;  %v3479_v42 = vor.u32 %v3478_v28, %v3475_v50  ;;  %v1278_v17 = vrot.slane %v6049_v15, 5  ;;  %v7214_v50 = vrot.slane %v3506_v16, 5 }
  0xd7   : > { %v3499_v52 = vrot.slane %v8330_v4, 4  ;;  %5941 = vmatprep.subr.msk.bf16.mxu1 %vm734_vm0, %v6047_v10  ;;  %v3489_v4 = vor.u32 %v3488_v9, %v7152_v22  ;;  %v8333_v28 = vshrl.u32 %v6861_v53, 16  ;;  %v4863_v10 = vcombine.low %v7145_v60, %v7168_v40  ;;  %v6055_v9 = vld [vmem:[%s6220_s27 + $0x90] sm:$0xf] }
  0xd8   : > { %5598 = vmatprep.mubr.msk.bf16.mxu0 %vm685_vm3, %v8332_v19  ;;  %v6048_v19 = vld [vmem:[%s6220_s27 + $0x6c] sm:$0xf]  ;;  %v7229_v15 = vsel %vm6512_vm7, %v1270_v23, %v1271_v35  ;;  %v7231_v53 = vrot.slane %v3479_v42, 4  ;;  %v3530_v16 = vshll.u32 %v6867_v6, 16  ;;  %v7236_v40 = vrot.slane %v3492_v38, 5 }
  0xd9   : > { %v4849_v55 = vrot.slane %v6048_v19, 9  ;;  %v3512_v25 = vrot.slane %v8333_v28, 4  ;;  %v3503_v44 = vor.u32 %v3502_v26, %v3499_v52  ;;  %v7225_v19 = vsel %vm6512_vm7, %v4848_v45, %v1268_v31  ;;  %v6050_v38 = vld [vmem:[%s6220_s27 + $0x78] sm:$0xf] }
  0xda   : > { %v7234_v60 = vrot.slane %v3489_v4, 4  ;;  %v3516_v31 = vshll.u32 %v7212_v24, 16  ;;  %v8334_v26 = vcombine.low %v7074_v18, %v7082_v27  ;;  %v8335_v45 = vcombine.low %v7045_v8, %v7048_v21 }
  0xdb   : > { %v7240_v43 = vsel %vm6512_vm7, %v4849_v55, %v1275_v20  ;;  %v7253_v52 = vsel %vm6512_vm7, %v1277_v63, %v1278_v17  ;;  %v3513_v20 = vor.u32 %v3512_v25, %v7214_v50  ;;  %v8336_v23 = vshrl.u32 %v6864_v61, 16  ;;  %v6051_v63 = vld [vmem:[%s6220_s27 + $0x80] sm:$0x1] }
  0xdc   : > { %v8337_v42 = vshll.u32 %v6864_v61, 16  ;;  %v8338_v27 = vcombine.low %v7086_v29, %v7104_v57  ;;  %v8339_v18 = vcombine.low %v7057_v54, %v7062_v2  ;;  %v3504_v17 = vrot.slane %v3503_v44, 4  ;;  %v7348_v61 = vld [vmem:[%s6220_s27 + $0x50] sm:$0x1] }
  0xdd   : > { %5447 = vmatmul.mubr.msk.bf16.gmra.mrb[4].mxu1 %vm685_vm3, %v8334_v26  ;;  %5599 = vmatmul.mubr.msk.bf16.gmra.mrb[20].mxu0 %vm685_vm3, %v8335_v45  ;;  %v3523_v35 = vrot.slane %v8336_v23, 4  ;;  %v4850_v55 = vrot.slane %v6050_v38, 9  ;;  %v1284_v25 = vrot.slane %v1282_v51, 4  ;;  %v1285_v28 = vrot.slane %v6051_v63, 5  ;;  %v7271_v26 = vld [vmem:[%s6220_s27 + $0x38] sm:$0x1] }
  0xde   : > { %v3526_v4 = vrot.slane %v8337_v42, 5  ;;  %5450 = vmatprep.mubr.msk.bf16.mxu1 %vm685_vm3, %v8338_v27  ;;  %5602 = vmatprep.mubr.msk.bf16.mxu0 %vm685_vm3, %v8339_v18  ;;  %8340 = vst [vmem:[#allocation16_spill] sm:$0xff] %v7271_v26  ;;  %v3485_v29 = vsel %vm6246_vm4, %v7231_v53, %v7152_v22  ;;  %v7279_v57 = vrot.slane %v3530_v16, 5  ;;  %v8341_v44 = vshrl.u32 %v6867_v6, 16 }
  0xdf   : > { %v3495_v23 = vsel %vm6246_vm4, %v7234_v60, %v7236_v40  ;;  %v7291_v27 = vsel %vm734_vm0, %v6882_v41, 0  ;;  %v3554_v22 = vshll.u32 %v6891_v58, 16  ;;  %v3514_v53 = vrot.slane %v3513_v20, 4 }
  0xe0   : > { %v3536_v45 = vrot.slane %v8341_v44, 4  ;;  %v3518_v16 = vrot.slane %v3516_v31, 5  ;;  %v3527_v6 = vor.u32 %v3526_v4, %v3523_v35  ;;  %v3540_v18 = vshll.u32 %v7271_v26, 16  ;;  %v6052_v31 = vld [vmem:[%s6220_s27 + $0x88] sm:$0xf] }
  0xe1   : > { %v3509_v60 = vsel %vm6246_vm4, %v3504_v17, %v7214_v50  ;;  %v7300_v40 = vsel %vm6512_vm7, %v4850_v55, %v1282_v51  ;;  %v7304_v41 = vsel %vm6512_vm7, %v1284_v25, %v1285_v28  ;;  %v3578_v38 = vshll.u32 %v6898_v13, 16  ;;  %v6053_v44 = vld [vmem:[%s6220_s27 + $0x84] sm:$0xf] }
  0xe2   : > { %v3537_v20 = vor.u32 %v3536_v45, %v7279_v57  ;;  %v1289_v35 = vrot.slane %v6052_v31, 5  ;;  %v8342_v4 = vshrl.u32 %v6888_v49, 16  ;;  %v8343_v50 = vshll.u32 %v6888_v49, 16  ;;  %v7315_v55 = vld [vmem:[%s6220_s27 + $0x44] sm:$0x1] }
  0xe3   : > { %v4851_v51 = vrot.slane %v6053_v44, 9  ;;  %v7317_v42 = vrot.slane %v3554_v22, 5  ;;  %v8344_v25 = vshrl.u32 %v6891_v58, 16  ;;  %v1296_v45 = vrot.slane %v6606_v11, 5 }
  0xe4   : > { %v3547_v63 = vrot.slane %v8342_v4, 4  ;;  %v3550_v17 = vrot.slane %v8343_v50, 5  ;;  %v8345_v31 = vcombine.low %v7130_v37, %v7134_v47  ;;  %v8346_v49 = vcombine.low %v7091_v14, %v7094_v3  ;;  %v6054_v50 = vld [vmem:[%s6220_s27 + $0x8c] sm:$0x1] }
  0xe5   : > { %v3560_v28 = vrot.slane %v8344_v25, 4  ;;  %v3519_v22 = vsel %vm6246_vm4, %v3514_v53, %v3518_v16  ;;  %v3528_v4 = vrot.slane %v3527_v6, 4  ;;  %v3542_v58 = vrot.slane %v3540_v18, 5 }
  0xe6   : > { %5451 = vmatmul.mubr.msk.bf16.gmra.mrb[8].mxu1 %vm685_vm3, %v8345_v31  ;;  %5603 = vmatmul.mubr.msk.bf16.gmra.mrb[24].mxu0 %vm685_vm3, %v8346_v49  ;;  %v1292_v44 = vrot.slane %v6054_v50, 5  ;;  %v8347_v11 = vcombine.low %v7118_v56, %v7126_v34  ;;  %v8348_v37 = vshrl.u32 %v6895_v46, 16  ;;  %v8349_v25 = vshll.u32 %v6895_v46, 16 }
  0xe7   : > { %5454 = vmatprep.mubr.msk.bf16.mxu1 %vm685_vm3, %v4863_v10  ;;  %v7342_v49 = vrot.slane %v3578_v38, 5  ;;  %v8350_v53 = vshrl.u32 %v6898_v13, 16  ;;  %v3538_v6 = vrot.slane %v3537_v20, 4  ;;  %v1291_v18 = vrot.slane %v1289_v35, 4 }
  0xe8   : > { %5606 = vmatprep.mubr.msk.bf16.mxu0 %vm685_vm3, %v8347_v11  ;;  %v3571_v47 = vrot.slane %v8348_v37, 4  ;;  %v3574_v31 = vrot.slane %v8349_v25, 5  ;;  %v3551_v50 = vor.u32 %v3550_v17, %v3547_v63  ;;  %v3564_v10 = vshll.u32 %v7315_v55, 16 }
  0xe9   : > { %v3584_v16 = vrot.slane %v8350_v53, 4  ;;  %v3561_v11 = vor.u32 %v3560_v28, %v7317_v42  ;;  %v4852_v26 = vrot.slane %v6055_v9, 9  ;;  %v1298_v37 = vrot.slane %v1296_v45, 4 }
  0xea   : > { %v1299_v46 = vrot.slane %v6614_v62, 5  ;;  %v5134_v25 = vcombine.low %v3485_v29, %v3495_v23  ;;  %v5135_v38 = vcombine.low %v3509_v60, %v3519_v22  ;;  %v4867_v13 = vcombine.low %v7300_v40, %v7304_v41 }
  0xeb   : > { %v3602_v20 = vshll.u32 %v6926_v7, 16  ;;  %v7358_v63 = vsel %vm6512_vm7, %v4851_v51, %v1289_v35  ;;  %v3575_v17 = vor.u32 %v3574_v31, %v3571_v47  ;;  %v3585_v28 = vor.u32 %v3584_v16, %v7342_v49 }
  0xec   : > { %v3588_v9 = vshll.u32 %v7348_v61, 16  ;;  %v3533_v62 = vsel %vm6246_vm4, %v3528_v4, %v7279_v57  ;;  %v3543_v29 = vsel %vm6246_vm4, %v3538_v6, %v3542_v58  ;;  %v7369_v23 = vsel %vm6512_vm7, %v1291_v18, %v1292_v44  ;;  %v7388_v4 = vld [vmem:[%s6220_s27 + $0x5c] sm:$0x1]  ;;  %v6056_v18 = vld [vmem:[%s6220_s27 + $0xa0] sm:$0xf] }
  0xed   : > { %v3552_v60 = vrot.slane %v3551_v50, 4  ;;  %v3562_v40 = vrot.slane %v3561_v11, 4  ;;  %v3566_v41 = vrot.slane %v3564_v10, 5  ;;  %v7373_v35 = vsel %vm6512_vm7, %v4852_v26, %v1296_v45 }
  0xee   : > { %v7377_v51 = vsel %vm6512_vm7, %v1298_v37, %v1299_v46  ;;  %v8351_v57 = vcombine.low %v7185_v5, %v7198_v30  ;;  %v8352_v22 = vcombine.low %v7150_v59, %v7171_v48  ;;  %v8353_v58 = vshrl.u32 %v6923_v39, 16  ;;  %v6057_v37 = vld [vmem:[%s6220_s27 + $0x9c] sm:$0xf] }
  0xef   : > { %v8354_v45 = vshll.u32 %v6923_v39, 16  ;;  %v7394_v47 = vrot.slane %v3602_v20, 5  ;;  %v8355_v5 = vshrl.u32 %v6926_v7, 16  ;;  %v8356_v31 = vcombine.low %v7225_v19, %v7229_v15  ;;  %v6058_v20 = vld [vmem:[%s6220_s27 + $0xa4] sm:$0x1] }
  0xf0   : > { %5455 = vmatmul.mubr.msk.bf16.gmra.mrb[12].mxu1 %vm685_vm3, %v8351_v57  ;;  %5607 = vmatmul.mubr.msk.bf16.gmra.mrb[28].mxu0 %vm685_vm3, %v8352_v22  ;;  %v3595_v26 = vrot.slane %v8353_v58, 4  ;;  %v3576_v53 = vrot.slane %v3575_v17, 4  ;;  %v3586_v16 = vrot.slane %v3585_v28, 4  ;;  %v3590_v6 = vrot.slane %v3588_v9, 5  ;;  %v8358_v57 = vld [vmem:[#allocation8_spill] sm:$0xff] }
  0xf1   : > { %v3598_v44 = vrot.slane %v8354_v45, 5  ;;  %v3608_v30 = vrot.slane %v8355_v5, 4  ;;  %5458 = vmatprep.mubr.msk.bf16.mxu1 %vm685_vm3, %v8356_v31  ;;  %5612 = vmatprep.mubr.msk.bf16.mxu0 %vm685_vm3, %v5134_v25  ;;  %v1303_v39 = vrot.slane %v6056_v18, 5  ;;  %v5136_v50 = vcombine.low %v3533_v62, %v3543_v29 }
  0xf2   : > { %v4868_v10 = vcombine.low %v7358_v63, %v7369_v23  ;;  %v3557_v7 = vsel %vm6246_vm4, %v3552_v60, %v7317_v42  ;;  %v3626_v19 = vshll.u32 %v6940_v36, 16  ;;  %v3567_v15 = vsel %vm6246_vm4, %v3562_v40, %v3566_v41  ;;  %v8357_v40 = vld [vmem:[#allocation3_spill] sm:$0xff] }
  0xf3   : > { %v4869_v11 = vcombine.low %v7373_v35, %v7377_v51  ;;  %v4853_v46 = vrot.slane %v6057_v37, 9  ;;  %v3612_v25 = vshll.u32 %v7388_v4, 16  ;;  %v1306_v17 = vrot.slane %v6058_v20, 5 }
  0xf4   : > { %v3599_v28 = vor.u32 %v3598_v44, %v3595_v26  ;;  %v3609_v9 = vor.u32 %v3608_v30, %v7394_v47  ;;  %v1310_v42 = vrot.slane %v6657_v1, 5  ;;  %v3581_v62 = vsel %vm6246_vm4, %v3576_v53, %v7342_v49  ;;  %v7438_v53 = vld [vmem:[%s6220_s27 + $0x68] sm:$0x1] }
  0xf5   : > { %v3591_v29 = vsel %vm6246_vm4, %v3586_v16, %v3590_v6  ;;  %v1305_v60 = vrot.slane %v1303_v39, 4  ;;  %v4854_v41 = vrot.slane %v8357_v40, 9  ;;  %v8359_v22 = vshrl.u32 %v8358_v57, 16  ;;  %v8362_v16 = vld [vmem:[#allocation10_spill] sm:$0xff] }
  0xf6   : > { %v8360_v45 = vshll.u32 %v8358_v57, 16  ;;  %v7429_v44 = vrot.slane %v3626_v19, 5  ;;  %v8361_v1 = vshrl.u32 %v6940_v36, 16  ;;  %v5137_v30 = vcombine.low %v3557_v7, %v3567_v15  ;;  %v8364_v7 = vld [vmem:[#allocation4_spill] sm:$0xff] }
  0xf7   : > { %v3619_v58 = vrot.slane %v8359_v22, 4  ;;  %v7435_v49 = vsel %vm6512_vm7, %v4853_v46, %v1303_v39  ;;  %v3614_v31 = vrot.slane %v3612_v25, 5  ;;  %v3650_v6 = vshll.u32 %v8362_v16, 16 }
  0xf8   : > { %v3622_v26 = vrot.slane %v8360_v45, 5  ;;  %v3632_v5 = vrot.slane %v8361_v1, 4  ;;  %v8363_v18 = vcombine.low %v7240_v43, %v7253_v52  ;;  %5613 = vmatmul.mubr.msk.bf16.vlgmr.msra.gmra.mrb[0].mxu0 %vm685_vm3, %v5135_v38  ;;  %v3600_v19 = vrot.slane %v3599_v28, 4  ;;  %v8365_v52 = vld [vmem:[#allocation12_spill] sm:$0xff]  ;;  %v8372_v1 = vld [vmem:[#allocation11_spill] sm:$0xff] }
  0xf9   : > { %v3610_v36 = vrot.slane %v3609_v9, 4  ;;  %v1312_v37 = vrot.slane %v1310_v42, 4  ;;  %v1313_v15 = vrot.slane %v8364_v7, 5  ;;  %5645 = vmatpush3.bf16.msra.mxu0 %v7291_v27  ;;  %v5138_v39 = vcombine.low %v3581_v62, %v3591_v29  ;;  %5616 = vmatprep.mubr.msk.bf16.mxu0 %vm685_vm3, %v5136_v50  ;;  %v8367_v9 = vld [vmem:[#allocation9_spill] sm:$0xff] }
  0xfa   : > { %5459 = vmatmul.mubr.msk.bf16.gmra.mrb[16].mxu1 %vm685_vm3, %v8363_v18  ;;  %v7451_v46 = vsel %vm6512_vm7, %v1305_v60, %v1306_v17  ;;  %v7455_v43 = vsel %vm6512_vm7, %v4854_v41, %v1310_v42  ;;  %v3674_v38 = vshll.u32 %v8365_v52, 16  ;;  %v3623_v25 = vor.u32 %v3622_v26, %v3619_v58  ;;  %v8371_v58 = vld [vmem:[#allocation5_spill] sm:$0xff]  ;;  %v7481_v26 = vld [vmem:[%s6220_s27 + $0x74] sm:$0x1] }
  0xfb   : > { %5462 = vmatprep.mubr.msk.bf16.mxu1 %vm685_vm3, %v4867_v13  ;;  %v3633_v20 = vor.u32 %v3632_v5, %v7429_v44  ;;  %v3636_v27 = vshll.u32 %v7438_v53, 16  ;;  %v8366_v13 = vld [vmem:[#allocation6_spill] sm:$0xff]  ;;  %v8368_v62 = vshrl.u32 %v8367_v9, 16  ;;  %v8369_v29 = vshll.u32 %v8367_v9, 16 }
  0xfc   : > { %v1317_v28 = vrot.slane %v8366_v13, 5  ;;  %v7466_v42 = vrot.slane %v3650_v6, 5  ;;  %v8370_v40 = vshrl.u32 %v8362_v16, 16  ;;  %v3605_v50 = vsel %vm6246_vm4, %v3600_v19, %v7394_v47  ;;  %v7493_v9 = vld [vmem:[%s6220_s27 + $0x80] sm:$0x1] }
  0xfd   : > { %v3643_v17 = vrot.slane %v8368_v62, 4  ;;  %v3646_v60 = vrot.slane %v8369_v29, 5  ;;  %v3615_v57 = vsel %vm6246_vm4, %v3610_v36, %v3614_v31  ;;  %v7477_v22 = vsel %vm6512_vm7, %v1312_v37, %v1313_v15  ;;  %v8376_v37 = vld [vmem:[#allocation7_spill] sm:$0xff] }
  0xfe   : > { %v3656_v41 = vrot.slane %v8370_v40, 4  ;;  %v4855_v45 = vrot.slane %v8371_v58, 9  ;;  %v8373_v5 = vshrl.u32 %v8372_v1, 16  ;;  %v8374_v16 = vshll.u32 %v8372_v1, 16 }
  0xff   : > { %v7487_v7 = vrot.slane %v3674_v38, 5  ;;  %v8375_v47 = vshrl.u32 %v8365_v52, 16  ;;  %v3624_v31 = vrot.slane %v3623_v25, 4  ;;  %v3634_v36 = vrot.slane %v3633_v20, 4 }
 0x100   : > { %v3667_v6 = vrot.slane %v8373_v5, 4  ;;  %v3670_v18 = vrot.slane %v8374_v16, 5  ;;  %v3638_v13 = vrot.slane %v3636_v27, 5  ;;  %v1320_v15 = vrot.slane %v8376_v37, 5  ;;  %5617 = vmatmul.mubr.msk.bf16.gmra.mrb[4].mxu0 %vm685_vm3, %v5137_v30  ;;  %v8377_v27 = vld [vmem:[#allocation13_spill] sm:$0xff] }
 0x101   : > { %v3680_v19 = vrot.slane %v8375_v47, 4  ;;  %v1319_v62 = vrot.slane %v1317_v28, 4  ;;  %v3647_v29 = vor.u32 %v3646_v60, %v3643_v17  ;;  %v3657_v40 = vor.u32 %v3656_v41, %v7466_v42  ;;  %5620 = vmatprep.mubr.msk.bf16.mxu0 %vm685_vm3, %v5138_v39  ;;  %v7538_v16 = vld [vmem:[%s6220_s27 + $0x8c] sm:$0x1] }
 0x102   : > { %v3660_v58 = vshll.u32 %v7481_v26, 16  ;;  %v3788_v1 = vshll.u32 %v7091_v14, 16  ;;  %5463 = vmatmul.mubr.msk.bf16.gmra.mrb[20].mxu1 %vm685_vm3, %v4868_v10  ;;  %v4870_v52 = vcombine.low %v7435_v49, %v7451_v46  ;;  %v4871_v38 = vcombine.low %v7455_v43, %v7477_v22 }
 0x103   : > { %v3698_v25 = vshll.u32 %v6995_v33, 16  ;;  %5466 = vmatprep.mubr.msk.bf16.mxu1 %vm685_vm3, %v4869_v11  ;;  %v5139_v63 = vcombine.low %v3605_v50, %v3615_v57  ;;  %v3671_v23 = vor.u32 %v3670_v18, %v3667_v6  ;;  %v3681_v10 = vor.u32 %v3680_v19, %v7487_v7  ;;  %v8381_v18 = vld [vmem:[#allocation14_spill] sm:$0xff] }
 0x104   : > { %v3684_v30 = vshll.u32 %v7493_v9, 16  ;;  %v3629_v49 = vsel %vm6246_vm4, %v3624_v31, %v7429_v44  ;;  %v3639_v46 = vsel %vm6246_vm4, %v3634_v36, %v3638_v13  ;;  %v7522_v35 = vsel %vm6512_vm7, %v4855_v45, %v1317_v28 }
 0x105   : > { %v3722_v51 = vshll.u32 %v7019_v0, 16  ;;  %v7527_v11 = vsel %vm6512_vm7, %v1319_v62, %v1320_v15  ;;  %v3648_v39 = vrot.slane %v3647_v29, 4  ;;  %v3658_v43 = vrot.slane %v3657_v40, 4  ;;  %v7555_v40 = vld [vmem:[%s6220_s27 + $0x98] sm:$0x1] }
 0x106   : > { %v3662_v20 = vrot.slane %v3660_v58, 5  ;;  %v8378_v17 = vshrl.u32 %v8377_v27, 16  ;;  %v8379_v60 = vshll.u32 %v8377_v27, 16  ;;  %v7533_v50 = vrot.slane %v3698_v25, 5  ;;  %v6059_v25 = vld [vmem:[%s6220_s27 + $0xc] sm:$0xf] }
 0x107   : > { %v8380_v28 = vshrl.u32 %v6995_v33, 16  ;;  %v5140_v22 = vcombine.low %v3629_v49, %v3639_v46  ;;  %v3672_v45 = vrot.slane %v3671_v23, 4  ;;  %v3682_v5 = vrot.slane %v3681_v10, 4 }
 0x108   : > { %v3691_v44 = vrot.slane %v8378_v17, 4  ;;  %v3694_v41 = vrot.slane %v8379_v60, 5  ;;  %v3686_v6 = vrot.slane %v3684_v30, 5  ;;  %v8382_v47 = vshrl.u32 %v8381_v18, 16  ;;  %5621 = vmatmul.mubr.msk.bf16.gmra.mrb[8].mxu0 %vm685_vm3, %v5139_v63 }
 0x109   : > { %v3704_v57 = vrot.slane %v8380_v28, 4  ;;  %v8383_v31 = vshll.u32 %v8381_v18, 16  ;;  %v7544_v13 = vrot.slane %v3722_v51, 5  ;;  %v8384_v37 = vshrl.u32 %v7019_v0, 16  ;;  %v6060_v0 = vld [vmem:[%s6220_s27 + $0x10] sm:$0xf]  ;;  %5624 = vmatprep.mubr.msk.bf16.mxu0 %vm685_vm3, %v5140_v22 }
 0x10a   : > { %v3715_v19 = vrot.slane %v8382_v47, 4  ;;  %v3798_v15 = vshrl.u32 %v7094_v3, 16  ;;  %v3653_v62 = vsel %vm6246_vm4, %v3648_v39, %v7466_v42  ;;  %v3663_v29 = vsel %vm6246_vm4, %v3658_v43, %v3662_v20  ;;  %5467 = vmatmul.mubr.msk.bf16.gmra.mrb[24].mxu1 %vm685_vm3, %v4870_v52  ;;  %v7585_v22 = vld [vmem:[%s6220_s27 + $0xa4] sm:$0x1] }
 0x10b   : > { %v3718_v36 = vrot.slane %v8383_v31, 5  ;;  %v3728_v33 = vrot.slane %v8384_v37, 4  ;;  %v3746_v58 = vshll.u32 %v7048_v21, 16  ;;  %v4938_v23 = vcombine.low %v6059_v25, %v6060_v0  ;;  %5470 = vmatprep.mubr.msk.bf16.mxu1 %vm685_vm3, %v4871_v38 }
 0x10c   : > { %v3695_v10 = vor.u32 %v3694_v41, %v3691_v44  ;;  %v3705_v30 = vor.u32 %v3704_v57, %v7533_v50  ;;  %v3708_v49 = vshll.u32 %v7538_v16, 16  ;;  %v4872_v42 = vcombine.low %v7522_v35, %v7527_v11 }
 0x10d   : > { %v3677_v52 = vsel %vm6246_vm4, %v3672_v45, %v7487_v7  ;;  %v3687_v63 = vsel %vm6246_vm4, %v3682_v5, %v3686_v6  ;;  %v3770_v46 = vshll.u32 %v7062_v2, 16  ;;  %v5141_v51 = vcombine.low %v3653_v62, %v3663_v29 }
 0x10e   : > { %v3719_v39 = vor.u32 %v3718_v36, %v3715_v19  ;;  %v3729_v43 = vor.u32 %v3728_v33, %v7544_v13  ;;  %v3732_v38 = vshll.u32 %v7555_v40, 16  ;;  %v8385_v20 = vshrl.u32 %v7045_v8, 16  ;;  %v7597_v33 = vld [vmem:[%s6220_s27 + $0xb0] sm:$0x1] }
 0x10f   : > { %v8386_v35 = vshll.u32 %v7045_v8, 16  ;;  %v7580_v17 = vrot.slane %v3746_v58, 5  ;;  %v8387_v7 = vshrl.u32 %v7048_v21, 16  ;;  %v5142_v60 = vcombine.low %v3677_v52, %v3687_v63 }
 0x110   : > { %v3739_v27 = vrot.slane %v8385_v20, 4  ;;  %v3696_v41 = vrot.slane %v3695_v10, 4  ;;  %v3706_v28 = vrot.slane %v3705_v30, 4  ;;  %v3710_v57 = vrot.slane %v3708_v49, 5  ;;  %5625 = vmatmul.mubr.msk.bf16.gmra.mrb[12].mxu0 %vm685_vm3, %v5141_v51  ;;  %v6061_v10 = vld [vmem:[%s6220_s27 + $0x18] sm:$0xf] }
 0x111   : > { %v3742_v11 = vrot.slane %v8386_v35, 5  ;;  %v3752_v44 = vrot.slane %v8387_v7, 4  ;;  %v8388_v45 = vshrl.u32 %v7057_v54, 16  ;;  %v8389_v6 = vshll.u32 %v7057_v54, 16  ;;  %5628 = vmatprep.mubr.msk.bf16.mxu0 %vm685_vm3, %v5142_v60  ;;  %v6062_v30 = vld [vmem:[%s6220_s27 + $0x1c] sm:$0xf] }
 0x112   : > { %v7591_v8 = vrot.slane %v3770_v46, 5  ;;  %v8390_v47 = vshrl.u32 %v7062_v2, 16  ;;  %v3809_v21 = vshrl.u32 %v7118_v56, 16  ;;  %v3720_v31 = vrot.slane %v3719_v39, 4  ;;  %5471 = vmatmul.mubr.msk.bf16.gmra.mrb[28].mxu1 %vm685_vm3, %v4872_v42  ;;  %v6063_v46 = vld [vmem:[%s6220_s27 + $0x24] sm:$0xf] }
 0x113   : > { %v3763_v5 = vrot.slane %v8388_v45, 4  ;;  %v3766_v18 = vrot.slane %v8389_v6, 5  ;;  %v3730_v36 = vrot.slane %v3729_v43, 4  ;;  %v3734_v37 = vrot.slane %v3732_v38, 5  ;;  %5476 = vmatprep.mubr.msk.bf16.mxu1 %vm685_vm3, %v4938_v23 }
 0x114   : > { %v3776_v19 = vrot.slane %v8390_v47, 4  ;;  %v3812_v62 = vshll.u32 %v7118_v56, 16  ;;  %v3743_v29 = vor.u32 %v3742_v11, %v3739_v27  ;;  %v3753_v54 = vor.u32 %v3752_v44, %v7580_v17  ;;  %v7626_v11 = vld [vmem:[%s6220_s27 + $0xbc] sm:$0x1] }
 0x115   : > { %v3756_v58 = vshll.u32 %v7585_v22, 16  ;;  %v3822_v2 = vshrl.u32 %v7126_v34, 16  ;;  %v3701_v25 = vsel %vm6246_vm4, %v3696_v41, %v7533_v50  ;;  %v3711_v56 = vsel %vm6246_vm4, %v3706_v28, %v3710_v57  ;;  %v6064_v50 = vld [vmem:[%s6220_s27 + $0x28] sm:$0xf] }
 0x116   : > { %v3794_v0 = vshll.u32 %v7094_v3, 16  ;;  %v4939_v49 = vcombine.low %v6061_v10, %v6062_v30  ;;  %v3767_v42 = vor.u32 %v3766_v18, %v3763_v5  ;;  %v3777_v52 = vor.u32 %v3776_v19, %v7591_v8 }
 0x117   : > { %v3780_v63 = vshll.u32 %v7597_v33, 16  ;;  %v4940_v51 = vcombine.low %v6063_v46, %v6064_v50  ;;  %v3725_v39 = vsel %vm6246_vm4, %v3720_v31, %v7544_v13  ;;  %v3735_v23 = vsel %vm6246_vm4, %v3730_v36, %v3734_v37  ;;  %v7644_v31 = vld [vmem:[%s6220_s27 + $0xc8] sm:$0x1]  ;;  %v8392_v37 = vld [vmem:[#allocation2_spill] sm:$0xff] }
 0x118   : > { %v3818_v43 = vshll.u32 %v7126_v34, 16  ;;  %v5143_v38 = vcombine.low %v3701_v25, %v3711_v56  ;;  %v3744_v20 = vrot.slane %v3743_v29, 4  ;;  %v3754_v27 = vrot.slane %v3753_v54, 4  ;;  %v6065_v25 = vld [vmem:[%s6220_s27 + $0x30] sm:$0xf] }
 0x119   : > { %v3758_v35 = vrot.slane %v3756_v58, 5  ;;  %v8391_v7 = vshrl.u32 %v7091_v14, 16  ;;  %v3790_v60 = vrot.slane %v3788_v1, 5  ;;  %v7632_v41 = vrot.slane %v3794_v0, 5  ;;  %v6066_v56 = vld [vmem:[%s6220_s27 + $0x34] sm:$0xf] }
 0x11a   : > { %v3800_v13 = vrot.slane %v3798_v15, 4  ;;  %v5144_v28 = vcombine.low %v3725_v39, %v3735_v23  ;;  %v3768_v34 = vrot.slane %v3767_v42, 4  ;;  %v3778_v57 = vrot.slane %v3777_v52, 4  ;;  %5477 = vmatmul.mubr.msk.bf16.vlgmr.msra.gmra.mrb[0].mxu1 %vm685_vm3, %v4939_v49  ;;  %5629 = vmatmul.mubr.msk.bf16.gmra.mrb[16].mxu0 %vm685_vm3, %v5143_v38  ;;  %v6067_v52 = vld [vmem:[%s6220_s27 + $0x3c] sm:$0xf] }
 0x11b   : > { %v3787_v44 = vrot.slane %v8391_v7, 4  ;;  %v3782_v45 = vrot.slane %v3780_v63, 5  ;;  %v3811_v5 = vrot.slane %v3809_v21, 4  ;;  %v3814_v6 = vrot.slane %v3812_v62, 5  ;;  %5679 = vmatpush3.bf16.msra.mxu1 %v8392_v37  ;;  %5480 = vmatprep.mubr.msk.bf16.mxu1 %vm685_vm3, %v4940_v51  ;;  %v6068_v63 = vld [vmem:[%s6220_s27 + $0x40] sm:$0xf] }
 0x11c   : > { %v7636_v18 = vrot.slane %v3818_v43, 5  ;;  %v3824_v47 = vrot.slane %v3822_v2, 4  ;;  %v3833_v19 = vshrl.u32 %v7150_v59, 16  ;;  %v3749_v14 = vsel %vm6246_vm4, %v3744_v20, %v7580_v17  ;;  %5632 = vmatprep.mubr.msk.bf16.mxu0 %vm685_vm3, %v5144_v28  ;;  %v7671_v20 = vld [vmem:[%s6220_s27 + $0xd4] sm:$0x1] }
 0x11d   : > { %v3804_v1 = vshll.u32 %v7626_v11, 16  ;;  %v3836_v3 = vshll.u32 %v7150_v59, 16  ;;  %v3759_v15 = vsel %vm6246_vm4, %v3754_v27, %v3758_v35  ;;  %v3791_v21 = vor.u32 %v3790_v60, %v3787_v44  ;;  %v6069_v44 = vld [vmem:[%s6220_s27 + $0x1c] sm:$0xf] }
 0x11e   : > { %v3801_v36 = vor.u32 %v3800_v13, %v7632_v41  ;;  %v3846_v17 = vshrl.u32 %v7171_v48, 16  ;;  %v3773_v59 = vsel %vm6246_vm4, %v3768_v34, %v7591_v8  ;;  %v3842_v62 = vshll.u32 %v7171_v48, 16  ;;  %v7682_v13 = vld [vmem:[%s6220_s27 + $0x78] sm:$0xf] }
 0x11f   : > { %v3783_v29 = vsel %vm6246_vm4, %v3778_v57, %v3782_v45  ;;  %v3815_v54 = vor.u32 %v3814_v6, %v3811_v5  ;;  %v3825_v58 = vor.u32 %v3824_v47, %v7636_v18  ;;  %v3828_v2 = vshll.u32 %v7644_v31, 16  ;;  %v7691_v45 = vld [vmem:[%s6220_s27 + $0x7c] sm:$0xf] }
 0x120   : > { %v4941_v0 = vcombine.low %v6065_v25, %v6066_v56  ;;  %v5145_v10 = vcombine.low %v3749_v14, %v3759_v15  ;;  %v3806_v8 = vrot.slane %v3804_v1, 5  ;;  %v3792_v30 = vrot.slane %v3791_v21, 4  ;;  %v6073_v14 = vld [vmem:[%s6220_s27 + $0x4c] sm:$0xf]  ;;  %v6074_v15 = vld [vmem:[%s6220_s27 + $0x54] sm:$0xf] }
 0x121   : > { %v3802_v49 = vrot.slane %v3801_v36, 4  ;;  %v3835_v48 = vrot.slane %v3833_v19, 4  ;;  %v3838_v42 = vrot.slane %v3836_v3, 5  ;;  %v4942_v46 = vcombine.low %v6067_v52, %v6068_v63  ;;  %v6072_v19 = vld [vmem:[%s6220_s27 + $0x48] sm:$0xf] }
 0x122   : > { %v5146_v50 = vcombine.low %v3773_v59, %v3783_v29  ;;  %v7668_v51 = vrot.slane %v3842_v62, 5  ;;  %v3848_v39 = vrot.slane %v3846_v17, 4  ;;  %v3816_v23 = vrot.slane %v3815_v54, 4  ;;  %5481 = vmatmul.mubr.msk.bf16.gmra.mrb[4].mxu1 %vm685_vm3, %v4941_v0  ;;  %5633 = vmatmul.mubr.msk.bf16.gmra.mrb[20].mxu0 %vm685_vm3, %v5145_v10  ;;  %v6075_v21 = vld [vmem:[%s6220_s27 + $0x58] sm:$0xf] }
 0x123   : > { %v3826_v43 = vrot.slane %v3825_v58, 4  ;;  %v3830_v38 = vrot.slane %v3828_v2, 5  ;;  %v3797_v27 = vsel %vm6246_vm4, %v3792_v30, %v7632_v41  ;;  %v3807_v35 = vsel %vm6246_vm4, %v3802_v49, %v3806_v8  ;;  %5484 = vmatprep.mubr.msk.bf16.mxu1 %vm685_vm3, %v4942_v46  ;;  %v6076_v17 = vld [vmem:[%s6220_s27 + $0x28] sm:$0xf]  ;;  %v6077_v62 = vld [vmem:[%s6220_s27 + $0x18] sm:$0xf] }
 0x124   : > { %v3839_v7 = vor.u32 %v3838_v42, %v3835_v48  ;;  %v4168_v60 = vrot.slane %v6069_v44, 5  ;;  %v2211_v28 = vshrl.u32 %v7682_v13, 16  ;;  %5636 = vmatprep.mubr.msk.bf16.mxu0 %vm685_vm3, %v5146_v50  ;;  %v3849_v41 = vor.u32 %v3848_v39, %v7668_v51  ;;  %v8393_v58 = vld [vmem:[#allocation15_spill] sm:$0xff]  ;;  %v6078_v0 = vld [vmem:[%s6220_s27 + $0x34] sm:$0xf] }
 0x125   : > { %v3852_v34 = vshll.u32 %v7671_v20, 16  ;;  %v2214_v57 = vshll.u32 %v7682_v13, 16  ;;  %v2220_v5 = vshll.u32 %v7691_v45, 16  ;;  %v3821_v6 = vsel %vm6246_vm4, %v3816_v23, %v7636_v18  ;;  %v6079_v42 = vld [vmem:[%s6220_s27 + $0x24] sm:$0xf] }
 0x126   : > { %v3831_v47 = vsel %vm6246_vm4, %v3826_v43, %v3830_v38  ;;  %v4943_v1 = vcombine.low %v6072_v19, %v6073_v14  ;;  %v5147_v3 = vcombine.low %v3797_v27, %v3807_v35  ;;  %v4944_v36 = vcombine.low %v6074_v15, %v6075_v21  ;;  %v6080_v43 = vld [vmem:[%s6220_s27 + $0x30] sm:$0xf]  ;;  %v7756_v15 = vld [vmem:[%s6220_s27 + $0x84] sm:$0xf]  ;;  %v7759_v21 = vld [vmem:[%s6220_s27 + $0x88] sm:$0xf] }
 0x127   : > { %v4175_v37 = vrot.slane %v6076_v17, 5  ;;  %v3840_v59 = vrot.slane %v3839_v7, 4  ;;  %v5166_v29 = vrot.slane %v6077_v62, 9  ;;  %v4170_v54 = vrot.slane %v4168_v60, 4  ;;  %v6081_v7 = vld [vmem:[%s6220_s27 + $0x40] sm:$0xf] }
 0x128   : > { %v4171_v18 = vrot.slane %v8393_v58, 5  ;;  %v5148_v2 = vcombine.low %v3821_v6, %v3831_v47  ;;  %v3850_v25 = vrot.slane %v3849_v41, 4  ;;  %v3854_v56 = vrot.slane %v3852_v34, 5  ;;  %v6083_v34 = vld [vmem:[%s6220_s27 + $0x60] sm:$0xf] }
 0x129   : > { %v4182_v10 = vrot.slane %v6078_v0, 5  ;;  %v7707_v8 = vrot.slane %v2211_v28, 4  ;;  %v7709_v30 = vrot.slane %v2214_v57, 5  ;;  %v2224_v49 = vshrl.u32 %v7691_v45, 16  ;;  %v7735_v28 = vld [vmem:[%s6220_s27 + $0x80] sm:$0x1] }
 0x12a   : > { %v7712_v48 = vrot.slane %v2220_v5, 5  ;;  %v5167_v52 = vrot.slane %v6079_v42, 9  ;;  %v4177_v63 = vrot.slane %v4175_v37, 4  ;;  %v4178_v46 = vrot.slane %v7212_v24, 5  ;;  %5485 = vmatmul.mubr.msk.bf16.gmra.mrb[8].mxu1 %vm685_vm3, %v4943_v1  ;;  %5637 = vmatmul.mubr.msk.bf16.gmra.mrb[24].mxu0 %vm685_vm3, %v5147_v3  ;;  %v6084_v57 = vld [vmem:[%s6220_s27 + $0x64] sm:$0xf] }
 0x12b   : > { %v3845_v50 = vsel %vm6246_vm4, %v3840_v59, %v7668_v51  ;;  %v4169_v39 = vsel %vm6512_vm7, %v5166_v29, %v4168_v60  ;;  %v4172_v23 = vsel %vm6512_vm7, %v4170_v54, %v4171_v18  ;;  %v5168_v24 = vrot.slane %v6080_v43, 9  ;;  %5488 = vmatprep.mubr.msk.bf16.mxu1 %vm685_vm3, %v4944_v36  ;;  %5640 = vmatprep.mubr.msk.bf16.mxu0 %vm685_vm3, %v5148_v2  ;;  %v8394_v51 = vld [vmem:[#allocation16_spill] sm:$0xff]  ;;  %v6085_v6 = vld [vmem:[%s6220_s27 + $0x6c] sm:$0xf]  ;;  %v6089_v62 = vld [vmem:[%s6220_s27 + $0x3c] sm:$0xf] }
 0x12c   : > { %v3855_v38 = vsel %vm6246_vm4, %v3850_v25, %v3854_v56  ;;  %v4184_v27 = vrot.slane %v4182_v10, 4  ;;  %v4185_v35 = vrot.slane %v8394_v51, 5  ;;  %v4189_v44 = vrot.slane %v6081_v7, 5  ;;  %v7742_v47 = vld [vmem:[%s6220_s27 + $0x70] sm:$0xf] }
 0x12d   : > { %v7732_v60 = vrot.slane %v2224_v49, 4  ;;  %v2230_v41 = vshll.u32 %v7735_v28, 16  ;;  %v4945_v5 = vcombine.low %v6083_v34, %v6084_v57  ;;  %v4946_v19 = vcombine.low %v6085_v6, %v7742_v47  ;;  %v7773_v58 = vld [vmem:[%s6220_s27 + $0x94] sm:$0xf]  ;;  %v7776_v18 = vld [vmem:[%s6220_s27 + $0x90] sm:$0xf] }
 0x12e   : > { %v4947_v14 = vcombine.low %v7682_v13, %v7691_v45  ;;  %v7749_v1 = vsel %vm6512_vm7, %v5167_v52, %v4175_v37  ;;  %v7753_v3 = vsel %vm6512_vm7, %v4177_v63, %v4178_v46  ;;  %v4948_v36 = vcombine.low %v7756_v15, %v7759_v21  ;;  %v7785_v63 = vld [vmem:[%s6220_s27 + $0x9c] sm:$0xf]  ;;  %v7788_v46 = vld [vmem:[%s6220_s27 + $0xa0] sm:$0xf]  ;;  %v6096_v43 = vld [vmem:[%s6220_s27 + $0x58] sm:$0xf] }
 0x12f   : > { %v5149_v17 = vcombine.low %v3845_v50, %v3855_v38  ;;  %v5183_v59 = vcombine.low %v4169_v39, %v4172_v23  ;;  %v7765_v37 = vsel %vm6512_vm7, %v5168_v24, %v4182_v10  ;;  %v5169_v29 = vrot.slane %v6089_v62, 9  ;;  %v6092_v10 = vld [vmem:[%s6220_s27 + $0x4c] sm:$0xf]  ;;  %v6095_v39 = vld [vmem:[%s6220_s27 + $0x48] sm:$0xf] }
 0x130   : > { %v7770_v54 = vsel %vm6512_vm7, %v4184_v27, %v4185_v35  ;;  %v4949_v2 = vcombine.low %v7776_v18, %v7773_v58  ;;  %v4191_v25 = vrot.slane %v4189_v44, 4  ;;  %v4192_v56 = vrot.slane %v7315_v55, 5  ;;  %v6097_v24 = vld [vmem:[%s6220_s27 + $0x64] sm:$0xf]  ;;  %v6098_v7 = vld [vmem:[%s6220_s27 + $0x70] sm:$0xf] }
 0x131   : > { %v5184_v0 = vcombine.low %v7749_v1, %v7753_v3  ;;  %v4196_v49 = vrot.slane %v6092_v10, 5  ;;  %v2187_v42 = vshrl.u32 %v6085_v6, 16  ;;  %v2190_v52 = vshll.u32 %v6085_v6, 16  ;;  %v6100_v62 = vld [vmem:[%s6220_s27 + $0x60] sm:$0xf] }
 0x132   : > { %v4950_v50 = vcombine.low %v7785_v63, %v7788_v46  ;;  %v5170_v23 = vrot.slane %v6095_v39, 9  ;;  %v4203_v55 = vrot.slane %v6096_v43, 5  ;;  %v4210_v38 = vrot.slane %v6097_v24, 5  ;;  %5489 = vmatmul.mubr.msk.bf16.gmra.mrb[12].mxu1 %vm685_vm3, %v4945_v5  ;;  %5641 = vmatmul.mubr.msk.bf16.gmra.mrb[28].mxu0 %vm685_vm3, %v5149_v17  ;;  %v6099_v5 = vld [vmem:[%s6220_s27 + $0x54] sm:$0xf] }
 0x133   : > { %v5185_v27 = vcombine.low %v7765_v37, %v7770_v54  ;;  %v7801_v51 = vsel %vm6512_vm7, %v5169_v29, %v4189_v44  ;;  %v4199_v35 = vrot.slane %v7348_v61, 5  ;;  %v4217_v34 = vrot.slane %v6098_v7, 5  ;;  %5492 = vmatprep.mubr.msk.bf16.mxu1 %vm685_vm3, %v4946_v19  ;;  %5646 = vmatprep.mubr.msk.bf16.mxu0 %vm685_vm3, %v5183_v59  ;;  %v6103_v10 = vld [vmem:[%s6220_s27 + $0x6c] sm:$0xf]  ;;  %v7888_v45 = vld [vmem:[%s6220_s27 + $0xc4] sm:$0xf] }
 0x134   : > { %v7809_v57 = vsel %vm6512_vm7, %v4191_v25, %v4192_v56  ;;  %v5171_v6 = vrot.slane %v6099_v5, 9  ;;  %v2196_v44 = vshll.u32 %v7742_v47, 16  ;;  %v2200_v1 = vshrl.u32 %v7742_v47, 16  ;;  %v7818_v25 = vld [vmem:[%s6220_s27 + $0xac] sm:$0xf] }
 0x135   : > { %v4198_v61 = vrot.slane %v4196_v49, 4  ;;  %v4206_v3 = vrot.slane %v7388_v4, 5  ;;  %v2189_v17 = vrot.slane %v2187_v42, 4  ;;  %v2192_v19 = vrot.slane %v2190_v52, 5  ;;  %v7821_v56 = vld [vmem:[%s6220_s27 + $0xa8] sm:$0xf] }
 0x136   : > { %v4205_v37 = vrot.slane %v4203_v55, 4  ;;  %v5172_v59 = vrot.slane %v6100_v62, 9  ;;  %v4212_v29 = vrot.slane %v4210_v38, 4  ;;  %v4213_v54 = vrot.slane %v7438_v53, 5  ;;  %v7845_v62 = vld [vmem:[%s6220_s27 + $0xb4] sm:$0xf] }
 0x137   : > { %v4951_v47 = vcombine.low %v7821_v56, %v7818_v25  ;;  %v5173_v39 = vrot.slane %v6103_v10, 9  ;;  %v4219_v4 = vrot.slane %v4217_v34, 4  ;;  %v4220_v42 = vrot.slane %v7481_v26, 5  ;;  %v7842_v26 = vld [vmem:[%s6220_s27 + $0xb8] sm:$0xf] }
 0x138   : > { %v5186_v52 = vcombine.low %v7801_v51, %v7809_v57  ;;  %v7831_v43 = vsel %vm6512_vm7, %v5170_v23, %v4196_v49  ;;  %v7833_v53 = vrot.slane %v2196_v44, 5  ;;  %v2202_v24 = vrot.slane %v2200_v1, 4  ;;  %v6106_v57 = vld [vmem:[%s6220_s27 + $0x7c] sm:$0xf]  ;;  %v6107_v1 = vld [vmem:[%s6220_s27 + $0x74] sm:$0x1] }
 0x139   : > { %v4200_v7 = vsel %vm6512_vm7, %v4198_v61, %v4199_v35  ;;  %v7839_v5 = vsel %vm6512_vm7, %v5171_v6, %v4203_v55  ;;  %v4952_v49 = vcombine.low %v7845_v62, %v7842_v26  ;;  %v2193_v23 = vor.u32 %v2192_v19, %v2189_v17 }
 0x13a   : > { %v7851_v51 = vsel %vm6512_vm7, %v4205_v37, %v4206_v3  ;;  %v7855_v35 = vsel %vm6512_vm7, %v5172_v59, %v4210_v38  ;;  %v7859_v55 = vsel %vm6512_vm7, %v4212_v29, %v4213_v54  ;;  %v4224_v6 = vrot.slane %v6106_v57, 5  ;;  %5493 = vmatmul.mubr.msk.bf16.gmra.mrb[16].mxu1 %vm685_vm3, %v4947_v14  ;;  %5647 = vmatmul.mubr.msk.bf16.vlgmr.msra.gmra.mrb[0].mxu0 %vm685_vm3, %v5184_v0  ;;  %v6108_v3 = vld [vmem:[%s6220_s27 + $0x78] sm:$0xf]  ;;  %v7891_v14 = vld [vmem:[%s6220_s27 + $0xc0] sm:$0xf] }
 0x13b   : > { %v7869_v44 = vsel %vm6512_vm7, %v5173_v39, %v4217_v34  ;;  %v7873_v38 = vsel %vm6512_vm7, %v4219_v4, %v4220_v42  ;;  %v2206_v61 = vshll.u32 %v6107_v1, 16  ;;  %v5174_v17 = vrot.slane %v6108_v3, 9  ;;  %5496 = vmatprep.mubr.msk.bf16.mxu1 %vm685_vm3, %v4948_v36  ;;  %5650 = vmatprep.mubr.msk.bf16.mxu0 %vm685_vm3, %v5185_v27  ;;  %v6111_v4 = vld [vmem:[%s6220_s27 + $0x84] sm:$0xf]  ;;  %v6112_v57 = vld [vmem:[%s6220_s27 + $0x88] sm:$0xf] }
 0x13c   : > { %v7879_v19 = vrot.slane %v2230_v41, 5  ;;  %v5187_v13 = vcombine.low %v7831_v43, %v4200_v7  ;;  %v4953_v0 = vcombine.low %v7891_v14, %v7888_v45  ;;  %v2203_v28 = vor.u32 %v2202_v24, %v7833_v53  ;;  %v6113_v1 = vld [vmem:[%s6220_s27 + $0x94] sm:$0xf] }
 0x13d   : > { %v5188_v41 = vcombine.low %v7839_v5, %v7851_v51  ;;  %v7898_v34 = vrot.slane %v2193_v23, 4  ;;  %v2217_v36 = vor.u32 %v7709_v30, %v7707_v8  ;;  %v2227_v27 = vor.u32 %v7732_v60, %v7712_v48 }
 0x13e   : > { %v5189_v37 = vcombine.low %v7855_v35, %v7859_v55  ;;  %v5190_v59 = vcombine.low %v7869_v44, %v7873_v38  ;;  %v4226_v29 = vrot.slane %v4224_v6, 4  ;;  %v4227_v54 = vrot.slane %v7493_v9, 5 }
 0x13f   : > { %v7909_v10 = vrot.slane %v2206_v61, 5  ;;  %v7913_v39 = vsel %vm6512_vm7, %v5174_v17, %v4224_v6  ;;  %v2235_v8 = vshrl.u32 %v7756_v15, 16  ;;  %v2238_v30 = vshll.u32 %v7756_v15, 16 }
 0x140   : > { %v7917_v60 = vrot.slane %v2203_v28, 4  ;;  %v5175_v42 = vrot.slane %v6111_v4, 9  ;;  %v2244_v43 = vshll.u32 %v7759_v21, 16  ;;  %v2248_v24 = vshrl.u32 %v7759_v21, 16 }
 0x141   : > { %v2199_v9 = vsel %vm6246_vm4, %v7898_v34, %v7833_v53  ;;  %v7926_v7 = vrot.slane %v2217_v36, 4  ;;  %v7928_v23 = vrot.slane %v2227_v27, 4  ;;  %v4231_v6 = vrot.slane %v6112_v57, 5 }
 0x142   : > { %v7933_v15 = vsel %vm6512_vm7, %v4226_v29, %v4227_v54  ;;  %v4238_v61 = vrot.slane %v6113_v1, 5  ;;  %v2259_v3 = vshrl.u32 %v7776_v18, 16  ;;  %v2262_v21 = vshll.u32 %v7776_v18, 16  ;;  %5497 = vmatmul.mubr.msk.bf16.gmra.mrb[20].mxu1 %vm685_vm3, %v4949_v2  ;;  %5651 = vmatmul.mubr.msk.bf16.gmra.mrb[4].mxu0 %vm685_vm3, %v5186_v52  ;;  %v6114_v54 = vld [vmem:[%s6220_s27 + $0x8c] sm:$0x1] }
 0x143   : > { %v2237_v17 = vrot.slane %v2235_v8, 4  ;;  %v2240_v28 = vrot.slane %v2238_v30, 5  ;;  %v2268_v36 = vshll.u32 %v7773_v58, 16  ;;  %v2272_v27 = vshrl.u32 %v7773_v58, 16  ;;  %5500 = vmatprep.mubr.msk.bf16.mxu1 %vm685_vm3, %v4950_v50  ;;  %5654 = vmatprep.mubr.msk.bf16.mxu0 %vm685_vm3, %v5187_v13  ;;  %v6115_v30 = vld [vmem:[%s6220_s27 + $0x90] sm:$0xf] }
 0x144   : > { %v2209_v18 = vsel %vm6246_vm4, %v7917_v60, %v7909_v10  ;;  %v4234_v2 = vrot.slane %v7538_v16, 5  ;;  %v7955_v52 = vrot.slane %v2244_v43, 5  ;;  %v2250_v29 = vrot.slane %v2248_v24, 4 }
 0x145   : > { %v5191_v58 = vcombine.low %v7913_v39, %v7933_v15  ;;  %v2223_v50 = vsel %vm6246_vm4, %v7926_v7, %v7712_v48  ;;  %v4233_v13 = vrot.slane %v4231_v6, 4  ;;  %v2254_v8 = vshll.u32 %v6114_v54, 16 }
 0x146   : > { %v5176_v4 = vrot.slane %v6115_v30, 9  ;;  %v4240_v10 = vrot.slane %v4238_v61, 4  ;;  %v2261_v60 = vrot.slane %v2259_v3, 4  ;;  %v2264_v16 = vrot.slane %v2262_v21, 5  ;;  %v6116_v3 = vld [vmem:[%s6220_s27 + $0xa0] sm:$0xf] }
 0x147   : > { %v2241_v43 = vor.u32 %v2240_v28, %v2237_v17  ;;  %v4241_v24 = vrot.slane %v7555_v40, 5  ;;  %v7966_v57 = vrot.slane %v2268_v36, 5  ;;  %v2274_v1 = vrot.slane %v2272_v27, 4 }
 0x148   : > { %v2233_v48 = vsel %vm6246_vm4, %v7928_v23, %v7879_v19  ;;  %v7974_v7 = vsel %vm6512_vm7, %v5175_v42, %v4231_v6  ;;  %v2251_v54 = vor.u32 %v2250_v29, %v7955_v52  ;;  %v4245_v21 = vrot.slane %v6116_v3, 5 }
 0x149   : > { %v7980_v40 = vsel %vm6512_vm7, %v4233_v13, %v4234_v2  ;;  %v2256_v17 = vrot.slane %v2254_v8, 5  ;;  %v2283_v28 = vshrl.u32 %v7785_v63, 16  ;;  %v2286_v36 = vshll.u32 %v7785_v63, 16  ;;  %v6117_v2 = vld [vmem:[%s6220_s27 + $0x98] sm:$0x1] }
 0x14a   : > { %v7986_v19 = vsel %vm6512_vm7, %v5176_v4, %v4238_v61  ;;  %v2265_v42 = vor.u32 %v2264_v16, %v2261_v60  ;;  %v2292_v23 = vshll.u32 %v7788_v46, 16  ;;  %v2296_v6 = vshrl.u32 %v7788_v46, 16  ;;  %5501 = vmatmul.mubr.msk.bf16.gmra.mrb[24].mxu1 %vm685_vm3, %v4951_v47  ;;  %5655 = vmatmul.mubr.msk.bf16.gmra.mrb[8].mxu0 %vm685_vm3, %v5188_v41  ;;  %v6118_v47 = vld [vmem:[%s6220_s27 + $0x9c] sm:$0xf]  ;;  %v6119_v60 = vld [vmem:[%s6220_s27 + $0xac] sm:$0xf] }
 0x14b   : > { %v2242_v63 = vrot.slane %v2241_v43, 4  ;;  %v8000_v61 = vsel %vm6512_vm7, %v4240_v10, %v4241_v24  ;;  %v2275_v27 = vor.u32 %v2274_v1, %v7966_v57  ;;  %v2278_v29 = vshll.u32 %v6117_v2, 16  ;;  %5504 = vmatprep.mubr.msk.bf16.mxu1 %vm685_vm3, %v4952_v49  ;;  %5658 = vmatprep.mubr.msk.bf16.mxu0 %vm685_vm3, %v5189_v37  ;;  %v6120_v43 = vld [vmem:[%s6220_s27 + $0xa4] sm:$0x1] }
 0x14c   : > { %v2252_v46 = vrot.slane %v2251_v54, 4  ;;  %v5177_v5 = vrot.slane %v6118_v47, 9  ;;  %v4247_v51 = vrot.slane %v4245_v21, 4  ;;  %v4248_v41 = vrot.slane %v7585_v22, 5 }
 0x14d   : > { %v4979_v13 = vcombine.low %v2199_v9, %v2209_v18  ;;  %v8019_v8 = vcombine.low %v2223_v50, %v2233_v48  ;;  %v2285_v49 = vrot.slane %v2283_v28, 4  ;;  %v2288_v35 = vrot.slane %v2286_v36, 5 }
 0x14e   : > { %v5192_v55 = vcombine.low %v7974_v7, %v7980_v40  ;;  %v2266_v37 = vrot.slane %v2265_v42, 4  ;;  %v8023_v30 = vrot.slane %v2292_v23, 5  ;;  %v2298_v4 = vrot.slane %v2296_v6, 4 }
 0x14f   : > { %v2247_v22 = vsel %vm6246_vm4, %v2242_v63, %v7955_v52  ;;  %v5193_v53 = vcombine.low %v7986_v19, %v8000_v61  ;;  %v2276_v34 = vrot.slane %v2275_v27, 4  ;;  %v2280_v9 = vrot.slane %v2278_v29, 5 }
 0x150   : > { %v2257_v18 = vsel %vm6246_vm4, %v2252_v46, %v2256_v17  ;;  %v8034_v50 = vsel %vm6512_vm7, %v5177_v5, %v4245_v21  ;;  %v8038_v10 = vsel %vm6512_vm7, %v4247_v51, %v4248_v41  ;;  %v4252_v16 = vrot.slane %v6119_v60, 5  ;;  %v6126_v60 = vld [vmem:[%s6220_s27 + $0xc4] sm:$0xf] }
 0x151   : > { %v2289_v52 = vor.u32 %v2288_v35, %v2285_v49  ;;  %v2302_v24 = vshll.u32 %v6120_v43, 16  ;;  %v2307_v1 = vshrl.u32 %v7821_v56, 16  ;;  %v2310_v48 = vshll.u32 %v7821_v56, 16  ;;  %v6123_v35 = vld [vmem:[%s6220_s27 + $0xb4] sm:$0xf] }
 0x152   : > { %v2271_v54 = vsel %vm6246_vm4, %v2266_v37, %v7966_v57  ;;  %v2299_v3 = vor.u32 %v2298_v4, %v8023_v30  ;;  %v2316_v21 = vshll.u32 %v7818_v25, 16  ;;  %v2320_v17 = vshrl.u32 %v7818_v25, 16  ;;  %5505 = vmatmul.mubr.msk.bf16.gmra.mrb[28].mxu1 %vm685_vm3, %v4953_v0  ;;  %5659 = vmatmul.mubr.msk.bf16.gmra.mrb[12].mxu0 %vm685_vm3, %v5190_v59  ;;  %v6121_v57 = vld [vmem:[%s6220_s27 + $0xa8] sm:$0xf] }
 0x153   : > { %v2281_v56 = vsel %vm6246_vm4, %v2276_v34, %v2280_v9  ;;  %v5178_v28 = vrot.slane %v6121_v57, 9  ;;  %v2331_v36 = vshrl.u32 %v7845_v62, 16  ;;  %v2334_v42 = vshll.u32 %v7845_v62, 16  ;;  %5526 = vmatprep.mubr.msk.bf16.mxu1 %vm685_vm3, %v4979_v13  ;;  %5662 = vmatprep.mubr.msk.bf16.mxu0 %vm685_vm3, %v5191_v58  ;;  %v6122_v13 = vld [vmem:[%s6220_s27 + $0xb0] sm:$0x1] }
 0x154   : > { %v4254_v25 = vrot.slane %v4252_v16, 4  ;;  %v4255_v44 = vrot.slane %v7597_v33, 5  ;;  %v2340_v38 = vshll.u32 %v7842_v26, 16  ;;  %v2344_v0 = vshrl.u32 %v7842_v26, 16  ;;  %v6124_v34 = vld [vmem:[%s6220_s27 + $0xb8] sm:$0xf] }
 0x155   : > { %v4981_v59 = vcombine.low %v2247_v22, %v2257_v18  ;;  %v2290_v23 = vrot.slane %v2289_v52, 4  ;;  %v2309_v6 = vrot.slane %v2307_v1, 4  ;;  %v2312_v63 = vrot.slane %v2310_v48, 5  ;;  %v6125_v18 = vld [vmem:[%s6220_s27 + $0xbc] sm:$0x1] }
 0x156   : > { %v2300_v62 = vrot.slane %v2299_v3, 4  ;;  %v2304_v27 = vrot.slane %v2302_v24, 5  ;;  %v8071_v2 = vrot.slane %v2316_v21, 5  ;;  %v2322_v39 = vrot.slane %v2320_v17, 4  ;;  %v6127_v17 = vld [vmem:[%s6220_s27 + $0xc0] sm:$0xf] }
 0x157   : > { %v4982_v15 = vcombine.low %v2271_v54, %v2281_v56  ;;  %v5194_v33 = vcombine.low %v8034_v50, %v8038_v10  ;;  %v2333_v58 = vrot.slane %v2331_v36, 4  ;;  %v2336_v29 = vrot.slane %v2334_v42, 5 }
 0x158   : > { %v4253_v26 = vsel %vm6512_vm7, %v5178_v28, %v4252_v16  ;;  %v4256_v46 = vsel %vm6512_vm7, %v4254_v25, %v4255_v44  ;;  %v8079_v47 = vrot.slane %v2340_v38, 5  ;;  %v2346_v5 = vrot.slane %v2344_v0, 4 }
 0x159   : > { %v2295_v51 = vsel %vm6246_vm4, %v2290_v23, %v8023_v30  ;;  %v2313_v41 = vor.u32 %v2312_v63, %v2309_v6  ;;  %v2326_v49 = vshll.u32 %v6122_v13, 16  ;;  %v5179_v37 = vrot.slane %v6123_v35, 9 }
 0x15a   : > { %v2305_v4 = vsel %vm6246_vm4, %v2300_v62, %v2304_v27  ;;  %v2323_v22 = vor.u32 %v2322_v39, %v8071_v2  ;;  %v4259_v9 = vrot.slane %v6124_v34, 5  ;;  %v2350_v50 = vshll.u32 %v6125_v18, 16  ;;  %5527 = vmatmul.mubr.msk.bf16.vlgmr.msra.gmra.mrb[16].mxu1 %vm685_vm3, %v8019_v8  ;;  %5663 = vmatmul.mubr.msk.bf16.gmra.mrb[16].mxu0 %vm685_vm3, %v5192_v55  ;;  %v6129_v27 = vld [vmem:[%s6220_s27 + $0xd0] sm:$0xf] }
 0x15b   : > { %v5195_v30 = vcombine.low %v4253_v26, %v4256_v46  ;;  %v2337_v10 = vor.u32 %v2336_v29, %v2333_v58  ;;  %v4266_v16 = vrot.slane %v6126_v60, 5  ;;  %v2355_v52 = vshrl.u32 %v7891_v14, 16  ;;  %5530 = vmatprep.mubr.msk.bf16.mxu1 %vm685_vm3, %v4981_v59  ;;  %5666 = vmatprep.mubr.msk.bf16.mxu0 %vm685_vm3, %v5193_v53  ;;  %v6128_v59 = vld [vmem:[%s6220_s27 + $0xc8] sm:$0x1]  ;;  %v6130_v26 = vld [vmem:[%s6220_s27 + $0xcc] sm:$0xf] }
 0x15c   : > { %v2347_v8 = vor.u32 %v2346_v5, %v8079_v47  ;;  %v2358_v7 = vshll.u32 %v7891_v14, 16  ;;  %v2364_v40 = vshll.u32 %v7888_v45, 16  ;;  %v2368_v55 = vshrl.u32 %v7888_v45, 16 }
 0x15d   : > { %v4983_v43 = vcombine.low %v2295_v51, %v2305_v4  ;;  %v2314_v24 = vrot.slane %v2313_v41, 4  ;;  %v2328_v1 = vrot.slane %v2326_v49, 5  ;;  %v4262_v48 = vrot.slane %v7626_v11, 5 }
 0x15e   : > { %v2324_v54 = vrot.slane %v2323_v22, 4  ;;  %v4261_v3 = vrot.slane %v4259_v9, 4  ;;  %v2352_v21 = vrot.slane %v2350_v50, 5  ;;  %v5180_v19 = vrot.slane %v6127_v17, 9 }
 0x15f   : > { %v2338_v61 = vrot.slane %v2337_v10, 4  ;;  %v4268_v53 = vrot.slane %v4266_v16, 4  ;;  %v4269_v56 = vrot.slane %v7644_v31, 5  ;;  %v2357_v14 = vrot.slane %v2355_v52, 4 }
 0x160   : > { %v2348_v57 = vrot.slane %v2347_v8, 4  ;;  %v2360_v28 = vrot.slane %v2358_v7, 5  ;;  %v2366_v36 = vrot.slane %v2364_v40, 5  ;;  %v2370_v45 = vrot.slane %v2368_v55, 4 }
 0x161   : > { %v2319_v42 = vsel %vm6246_vm4, %v2314_v24, %v8071_v2  ;;  %v2329_v11 = vsel %vm6246_vm4, %v2324_v54, %v2328_v1  ;;  %v4260_v25 = vsel %vm6512_vm7, %v5179_v37, %v4259_v9  ;;  %v4263_v44 = vsel %vm6512_vm7, %v4261_v3, %v4262_v48  ;;  %v8162_v24 = vld [vmem:[%s8281_s2] ss:$0 sm:$0xff] }
 0x162   : > { %5531 = vmatmul.mubr.msk.bf16.gmra.mrb[20].mxu1 %vm685_vm3, %v4982_v15  ;;  %5667 = vmatmul.mubr.msk.bf16.gmra.mrb[20].mxu0 %vm685_vm3, %v5194_v33  ;;  %v2343_v31 = vsel %vm6246_vm4, %v2338_v61, %v8079_v47  ;;  %v4267_v38 = vsel %vm6512_vm7, %v5180_v19, %v4266_v16  ;;  %v4270_v0 = vsel %vm6512_vm7, %v4268_v53, %v4269_v56  ;;  %v2374_v23 = vshll.u32 %v6128_v59, 16 }
 0x163   : > { %5534 = vmatprep.mubr.msk.bf16.mxu1 %vm685_vm3, %v4983_v43  ;;  %5670 = vmatprep.mubr.msk.bf16.mxu0 %vm685_vm3, %v5195_v30  ;;  %v2353_v6 = vsel %vm6246_vm4, %v2348_v57, %v2352_v21  ;;  %v2361_v63 = vor.u32 %v2360_v28, %v2357_v14  ;;  %v2371_v62 = vor.u32 %v2370_v45, %v2366_v36  ;;  %v4273_v2 = vrot.slane %v6129_v27, 5 }
 0x164   : > { %v4984_v39 = vcombine.low %v2319_v42, %v2329_v11  ;;  %v5196_v15 = vcombine.low %v4260_v25, %v4263_v44  ;;  %v4985_v33 = vcombine.low %v2343_v31, %v2353_v6  ;;  %v5197_v58 = vcombine.low %v4267_v38, %v4270_v0 }
 0x165   : > { %v2376_v29 = vrot.slane %v2374_v23, 5  ;;  %v5181_v46 = vrot.slane %v6130_v26, 9  ;;  %v2362_v47 = vrot.slane %v2361_v63, 4  ;;  %v2372_v5 = vrot.slane %v2371_v62, 4 }
 0x166   : > { %v4275_v51 = vrot.slane %v4273_v2, 4  ;;  %v4276_v41 = vrot.slane %v7671_v20, 5 }
 0x167   : > { %v4274_v13 = vsel %vm6512_vm7, %v5181_v46, %v4273_v2  ;;  %v2367_v49 = vsel %vm6246_vm4, %v2362_v47, %v2366_v36  ;;  %v2377_v35 = vsel %vm6246_vm4, %v2372_v5, %v2376_v29 }
 0x168   : > { %v4277_v20 = vsel %vm6512_vm7, %v4275_v51, %v4276_v41  ;;  %v4986_v37 = vcombine.low %v2367_v49, %v2377_v35 }
 0x169   : > { %v5198_v4 = vcombine.low %v4274_v13, %v4277_v20 }
 0x16a   : > { %5535 = vmatmul.mubr.msk.bf16.gmra.mrb[24].mxu1 %vm685_vm3, %v4984_v39  ;;  %5671 = vmatmul.mubr.msk.bf16.gmra.mrb[24].mxu0 %vm685_vm3, %v5196_v15 }
 0x16b   : > { %5538 = vmatprep.mubr.msk.bf16.mxu1 %vm685_vm3, %v4985_v33  ;;  %5674 = vmatprep.mubr.msk.bf16.mxu0 %vm685_vm3, %v5197_v58 }
 0x172   : > { %5539 = vmatmul.mubr.msk.bf16.gmra.mrb[28].mxu1 %vm685_vm3, %v4986_v37  ;;  %5675 = vmatmul.mubr.msk.bf16.gmra.mrb[28].mxu0 %vm685_vm3, %v5198_v4 }
 0x1ed   : > { %v5478_v22 = vpop.f32.mrb[0].mxu1 }
 0x1ee   : > { %v1835_v34 = vpop.f32.mrb[1].mxu1 }
 0x1ef   : > { %v5479_v9 = vpop.f32.mrb[2].mxu1 }
 0x1f0   : > { %v1838_v18 = vpop.f32.mrb[3].mxu1 }
 0x1f5   : > { %v5482_v50 = vpop.f32.mrb[4].mxu1 }
 0x1f6   : > { %v1851_v30 = vpop.f32.mrb[5].mxu1 }
 0x1f7   : > { %v5483_v10 = vpop.f32.mrb[6].mxu1 }
 0x1f8   : > { %v1854_v60 = vpop.f32.mrb[7].mxu1 }
 0x1fd   : > { %v5486_v32 = vpop.f32.mrb[8].mxu1 }
 0x1fe   : > { %v1867_v16 = vpop.f32.mrb[9].mxu1 }
 0x1ff   : > { %v5487_v52 = vpop.f32.mrb[10].mxu1 }
 0x200   : > { %v1870_v12 = vpop.f32.mrb[11].mxu1 }
 0x205   : > { %v8151_v8 = vpop.f32.mrb[12].mxu1 }
 0x206   : > { %v8153_v7 = vpop.f32.mrb[13].mxu1 }
 0x207   : > { %v8155_v40 = vpop.f32.mrb[14].mxu1 }
 0x208   : > { %v8157_v55 = vpop.f32.mrb[15].mxu1 }
 0x20d   : > { %v5648_v43 = vpop.f32.mrb[0].mxu0 }
 0x20e   : > { %v5680_v1 = vadd.f32 %v5648_v43, %v5478_v22  ;;  %v4413_v48 = vpop.f32.mrb[1].mxu0 }
 0x20f   : > { %v5681_v54 = vadd.f32 %v4413_v48, %v1835_v34  ;;  %v5649_v3 = vpop.f32.mrb[2].mxu0 }
 0x210   : > { %v4581_v21 = vadd.f32 %v5680_v1, %v8162_v24  ;;  %v5682_v17 = vadd.f32 %v5649_v3, %v5479_v9  ;;  %v4416_v19 = vpop.f32.mrb[3].mxu0 }
 0x211   : > { %v4579_v61 = vadd.f32 %v5681_v54, %v8162_v24  ;;  %v5683_v53 = vadd.f32 %v4416_v19, %v1838_v18 }
 0x212   : > { %v4613_v56 = vmax.f32 %v4581_v21, 0.0  ;;  %v4582_v14 = vadd.f32 %v5682_v17, %v8162_v24 }
 0x213   : > { %v4611_v57 = vmax.f32 %v4579_v61, 0.0  ;;  %v4580_v28 = vadd.f32 %v5683_v53, %v8162_v24 }
 0x214   : > { %4646 = vst.msk [vmem:[%s8169_s24 + $0x10] sm:$0xff] %vm4643_vm8, %v4613_v56  ;;  %v4614_v36 = vmax.f32 %v4582_v14, 0.0 }
 0x215   : > { %4644 = vst.msk [vmem:[%s8169_s24] sm:$0xff] %vm4643_vm8, %v4611_v57  ;;  %v4612_v45 = vmax.f32 %v4580_v28, 0.0  ;;  %v5652_v42 = vpop.f32.mrb[4].mxu0 }
 0x216   : > { %4647 = vst.msk [vmem:[%s8169_s24 + $0x18] sm:$0xff] %vm4643_vm8, %v4614_v36  ;;  %v5684_v11 = vadd.f32 %v5652_v42, %v5482_v50  ;;  %v4429_v25 = vpop.f32.mrb[5].mxu0 }
 0x217   : > { %4645 = vst.msk [vmem:[%s8169_s24 + $0x8] sm:$0xff] %vm4643_vm8, %v4612_v45  ;;  %v5685_v44 = vadd.f32 %v4429_v25, %v1851_v30  ;;  %v5653_v31 = vpop.f32.mrb[6].mxu0 }
 0x218   : > { %v4585_v38 = vadd.f32 %v5684_v11, %v8162_v24  ;;  %v5686_v0 = vadd.f32 %v5653_v31, %v5483_v10  ;;  %v4432_v59 = vpop.f32.mrb[7].mxu0 }
 0x219   : > { %v4583_v23 = vadd.f32 %v5685_v44, %v8162_v24  ;;  %v5687_v6 = vadd.f32 %v4432_v59, %v1854_v60 }
 0x21a   : > { %v4617_v63 = vmax.f32 %v4585_v38, 0.0  ;;  %v4586_v62 = vadd.f32 %v5686_v0, %v8162_v24 }
 0x21b   : > { %v4615_v27 = vmax.f32 %v4583_v23, 0.0  ;;  %v4584_v2 = vadd.f32 %v5687_v6, %v8162_v24 }
 0x21c   : > { %4650 = vst.msk [vmem:[%s8169_s24 + $0x30] sm:$0xff] %vm4643_vm8, %v4617_v63  ;;  %v4618_v39 = vmax.f32 %v4586_v62, 0.0 }
 0x21d   : > { %4648 = vst.msk [vmem:[%s8169_s24 + $0x20] sm:$0xff] %vm4643_vm8, %v4615_v27  ;;  %v4616_v15 = vmax.f32 %v4584_v2, 0.0  ;;  %v5656_v33 = vpop.f32.mrb[8].mxu0 }
 0x21e   : > { %4651 = vst.msk [vmem:[%s8169_s24 + $0x38] sm:$0xff] %vm4643_vm8, %v4618_v39  ;;  %v5688_v58 = vadd.f32 %v5656_v33, %v5486_v32  ;;  %v4445_v29 = vpop.f32.mrb[9].mxu0 }
 0x21f   : > { %4649 = vst.msk [vmem:[%s8169_s24 + $0x28] sm:$0xff] %vm4643_vm8, %v4616_v15  ;;  %v5689_v26 = vadd.f32 %v4445_v29, %v1867_v16  ;;  %v5657_v46 = vpop.f32.mrb[10].mxu0 }
 0x220   : > { %v4589_v47 = vadd.f32 %v5688_v58, %v8162_v24  ;;  %v5690_v5 = vadd.f32 %v5657_v46, %v5487_v52  ;;  %v4448_v51 = vpop.f32.mrb[11].mxu0 }
 0x221   : > { %v4587_v41 = vadd.f32 %v5689_v26, %v8162_v24  ;;  %v5691_v13 = vadd.f32 %v4448_v51, %v1870_v12 }
 0x222   : > { %v4621_v49 = vmax.f32 %v4589_v47, 0.0  ;;  %v4590_v35 = vadd.f32 %v5690_v5, %v8162_v24 }
 0x223   : > { %v4619_v20 = vmax.f32 %v4587_v41, 0.0  ;;  %v4588_v37 = vadd.f32 %v5691_v13, %v8162_v24 }
 0x224   : > { %4654 = vst.msk [vmem:[%s8169_s24 + $0x50] sm:$0xff] %vm4643_vm8, %v4621_v49  ;;  %v4622_v4 = vmax.f32 %v4590_v35, 0.0 }
 0x225   : > { %4652 = vst.msk [vmem:[%s8169_s24 + $0x40] sm:$0xff] %vm4643_vm8, %v4619_v20  ;;  %v4620_v22 = vmax.f32 %v4588_v37, 0.0  ;;  %v5660_v34 = vpop.f32.mrb[12].mxu0 }
 0x226   : > { %4655 = vst.msk [vmem:[%s8169_s24 + $0x58] sm:$0xff] %vm4643_vm8, %v4622_v4  ;;  %v5692_v9 = vadd.f32 %v5660_v34, %v8151_v8  ;;  %v4461_v18 = vpop.f32.mrb[13].mxu0 }
 0x227   : > { %4653 = vst.msk [vmem:[%s8169_s24 + $0x48] sm:$0xff] %vm4643_vm8, %v4620_v22  ;;  %v5693_v50 = vadd.f32 %v4461_v18, %v8153_v7  ;;  %v5661_v30 = vpop.f32.mrb[14].mxu0 }
 0x228   : > { %v4593_v10 = vadd.f32 %v5692_v9, %v8162_v24  ;;  %v5694_v60 = vadd.f32 %v5661_v30, %v8155_v40  ;;  %v4464_v32 = vpop.f32.mrb[15].mxu0 }
 0x229   : > { %v4591_v16 = vadd.f32 %v5693_v50, %v8162_v24  ;;  %v5695_v52 = vadd.f32 %v4464_v32, %v8157_v55 }
 0x22a   : > { %v4625_v12 = vmax.f32 %v4593_v10, 0.0  ;;  %v4594_v8 = vadd.f32 %v5694_v60, %v8162_v24 }
 0x22b   : > { %v4623_v43 = vmax.f32 %v4591_v16, 0.0  ;;  %v4592_v1 = vadd.f32 %v5695_v52, %v8162_v24 }
 0x22c   : > { %4658 = vst.msk [vmem:[%s8169_s24 + $0x70] sm:$0xff] %vm4643_vm8, %v4625_v12  ;;  %v4626_v7 = vmax.f32 %v4594_v8, 0.0 }
 0x22d   : > { %4656 = vst.msk [vmem:[%s8169_s24 + $0x60] sm:$0xff] %vm4643_vm8, %v4623_v43  ;;  %v4624_v48 = vmax.f32 %v4592_v1, 0.0  ;;  %v5528_v54 = vpop.f32.mrb[16].mxu1  ;;  %v5664_v40 = vpop.f32.mrb[16].mxu0 }
 0x22e   : > { %4659 = vst.msk [vmem:[%s8169_s24 + $0x78] sm:$0xff] %vm4643_vm8, %v4626_v7  ;;  %v5696_v3 = vadd.f32 %v5664_v40, %v5528_v54  ;;  %v2577_v21 = vpop.f32.mrb[17].mxu1  ;;  %v4477_v55 = vpop.f32.mrb[17].mxu0 }
 0x22f   : > { %4657 = vst.msk [vmem:[%s8169_s24 + $0x68] sm:$0xff] %vm4643_vm8, %v4624_v48  ;;  %v5697_v17 = vadd.f32 %v4477_v55, %v2577_v21  ;;  %v5529_v19 = vpop.f32.mrb[18].mxu1  ;;  %v5665_v61 = vpop.f32.mrb[18].mxu0 }
 0x230   : > { %v4597_v53 = vadd.f32 %v5696_v3, %v8162_v24  ;;  %v5698_v56 = vadd.f32 %v5665_v61, %v5529_v19  ;;  %v2580_v14 = vpop.f32.mrb[19].mxu1  ;;  %v4480_v57 = vpop.f32.mrb[19].mxu0 }
 0x231   : > { %v4595_v28 = vadd.f32 %v5697_v17, %v8162_v24  ;;  %v5699_v36 = vadd.f32 %v4480_v57, %v2580_v14 }
 0x232   : > { %v4629_v45 = vmax.f32 %v4597_v53, 0.0  ;;  %v4598_v42 = vadd.f32 %v5698_v56, %v8162_v24 }
 0x233   : > { %v4627_v11 = vmax.f32 %v4595_v28, 0.0  ;;  %v4596_v25 = vadd.f32 %v5699_v36, %v8162_v24 }
 0x234   : > { %4662 = vst.msk [vmem:[%s8169_s24 + $0x90] sm:$0xff] %vm4643_vm8, %v4629_v45  ;;  %v4630_v44 = vmax.f32 %v4598_v42, 0.0 }
 0x235   : > { %4660 = vst.msk [vmem:[%s8169_s24 + $0x80] sm:$0xff] %vm4643_vm8, %v4627_v11  ;;  %v4628_v31 = vmax.f32 %v4596_v25, 0.0  ;;  %v5532_v38 = vpop.f32.mrb[20].mxu1  ;;  %v5668_v0 = vpop.f32.mrb[20].mxu0 }
 0x236   : > { %4663 = vst.msk [vmem:[%s8169_s24 + $0x98] sm:$0xff] %vm4643_vm8, %v4630_v44  ;;  %v5700_v59 = vadd.f32 %v5668_v0, %v5532_v38  ;;  %v2593_v23 = vpop.f32.mrb[21].mxu1  ;;  %v4493_v6 = vpop.f32.mrb[21].mxu0 }
 0x237   : > { %4661 = vst.msk [vmem:[%s8169_s24 + $0x88] sm:$0xff] %vm4643_vm8, %v4628_v31  ;;  %v5701_v63 = vadd.f32 %v4493_v6, %v2593_v23  ;;  %v5533_v62 = vpop.f32.mrb[22].mxu1  ;;  %v5669_v27 = vpop.f32.mrb[22].mxu0 }
 0x238   : > { %v4601_v2 = vadd.f32 %v5700_v59, %v8162_v24  ;;  %v5702_v39 = vadd.f32 %v5669_v27, %v5533_v62  ;;  %v2596_v15 = vpop.f32.mrb[23].mxu1  ;;  %v4496_v33 = vpop.f32.mrb[23].mxu0 }
 0x239   : > { %v4599_v58 = vadd.f32 %v5701_v63, %v8162_v24  ;;  %v5703_v29 = vadd.f32 %v4496_v33, %v2596_v15 }
 0x23a   : > { %v4633_v26 = vmax.f32 %v4601_v2, 0.0  ;;  %v4602_v46 = vadd.f32 %v5702_v39, %v8162_v24 }
 0x23b   : > { %v4631_v47 = vmax.f32 %v4599_v58, 0.0  ;;  %v4600_v5 = vadd.f32 %v5703_v29, %v8162_v24 }
 0x23c   : > { %4666 = vst.msk [vmem:[%s8169_s24 + $0xb0] sm:$0xff] %vm4643_vm8, %v4633_v26  ;;  %v4634_v51 = vmax.f32 %v4602_v46, 0.0 }
 0x23d   : > { %4664 = vst.msk [vmem:[%s8169_s24 + $0xa0] sm:$0xff] %vm4643_vm8, %v4631_v47  ;;  %v4632_v41 = vmax.f32 %v4600_v5, 0.0  ;;  %v5536_v13 = vpop.f32.mrb[24].mxu1  ;;  %v5672_v49 = vpop.f32.mrb[24].mxu0 }
 0x23e   : > { %4667 = vst.msk [vmem:[%s8169_s24 + $0xb8] sm:$0xff] %vm4643_vm8, %v4634_v51  ;;  %v5704_v35 = vadd.f32 %v5672_v49, %v5536_v13  ;;  %v2609_v20 = vpop.f32.mrb[25].mxu1  ;;  %v4509_v37 = vpop.f32.mrb[25].mxu0 }
 0x23f   : > { %4665 = vst.msk [vmem:[%s8169_s24 + $0xa8] sm:$0xff] %vm4643_vm8, %v4632_v41  ;;  %v5705_v4 = vadd.f32 %v4509_v37, %v2609_v20  ;;  %v5537_v22 = vpop.f32.mrb[26].mxu1  ;;  %v5673_v34 = vpop.f32.mrb[26].mxu0 }
 0x240   : > { %v4605_v9 = vadd.f32 %v5704_v35, %v8162_v24  ;;  %v5706_v18 = vadd.f32 %v5673_v34, %v5537_v22  ;;  %v2612_v50 = vpop.f32.mrb[27].mxu1  ;;  %v4512_v30 = vpop.f32.mrb[27].mxu0 }
 0x241   : > { %v4603_v10 = vadd.f32 %v5705_v4, %v8162_v24  ;;  %v5707_v60 = vadd.f32 %v4512_v30, %v2612_v50 }
 0x242   : > { %v4637_v32 = vmax.f32 %v4605_v9, 0.0  ;;  %v4606_v16 = vadd.f32 %v5706_v18, %v8162_v24 }
 0x243   : > { %v4635_v52 = vmax.f32 %v4603_v10, 0.0  ;;  %v4604_v12 = vadd.f32 %v5707_v60, %v8162_v24 }
 0x244   : > { %4670 = vst.msk [vmem:[%s8169_s24 + $0xd0] sm:$0xff] %vm4643_vm8, %v4637_v32  ;;  %v4638_v8 = vmax.f32 %v4606_v16, 0.0 }
 0x245   : > { %4668 = vst.msk [vmem:[%s8169_s24 + $0xc0] sm:$0xff] %vm4643_vm8, %v4635_v52  ;;  %v4636_v43 = vmax.f32 %v4604_v12, 0.0  ;;  %v5540_v1 = vpop.f32.mrb[28].mxu1  ;;  %v5676_v7 = vpop.f32.mrb[28].mxu0 }
 0x246   : > { %4671 = vst.msk [vmem:[%s8169_s24 + $0xd8] sm:$0xff] %vm4643_vm8, %v4638_v8  ;;  %v5708_v48 = vadd.f32 %v5676_v7, %v5540_v1  ;;  %v2625_v54 = vpop.f32.mrb[29].mxu1  ;;  %v4525_v40 = vpop.f32.mrb[29].mxu0 }
 0x247   : > { %4669 = vst.msk [vmem:[%s8169_s24 + $0xc8] sm:$0xff] %vm4643_vm8, %v4636_v43  ;;  %v5709_v3 = vadd.f32 %v4525_v40, %v2625_v54  ;;  %v5541_v21 = vpop.f32.mrb[30].mxu1  ;;  %v5677_v55 = vpop.f32.mrb[30].mxu0 }
 0x248   : > { %v4609_v17 = vadd.f32 %v5708_v48, %v8162_v24  ;;  %v5710_v19 = vadd.f32 %v5677_v55, %v5541_v21  ;;  %v2628_v61 = vpop.f32.mrb[31].mxu1  ;;  %v4528_v53 = vpop.f32.mrb[31].mxu0 }
 0x249   : > { %v4607_v56 = vadd.f32 %v5709_v3, %v8162_v24  ;;  %v5711_v14 = vadd.f32 %v4528_v53, %v2628_v61 }
 0x24a   : > { %v4641_v57 = vmax.f32 %v4609_v17, 0.0  ;;  %v4610_v28 = vadd.f32 %v5710_v19, %v8162_v24 }
 0x24b   : > { %v4639_v36 = vmax.f32 %v4607_v56, 0.0  ;;  %v4608_v45 = vadd.f32 %v5711_v14, %v8162_v24 }
 0x24c   : > { %4674 = vst.msk [vmem:[%s8169_s24 + $0xf0] sm:$0xff] %vm4643_vm8, %v4641_v57  ;;  %v4642_v42 = vmax.f32 %v4610_v28, 0.0 }
 0x24d   : > { %4672 = vst.msk [vmem:[%s8169_s24 + $0xe0] sm:$0xff] %vm4643_vm8, %v4639_v36  ;;  %v4640_v11 = vmax.f32 %v4608_v45, 0.0 }
 0x24e   : > { %4675 = vst.msk [vmem:[%s8169_s24 + $0xf8] sm:$0xff] %vm4643_vm8, %v4642_v42 }
 0x24f   : > { %4673 = vst.msk [vmem:[%s8169_s24 + $0xe8] sm:$0xff] %vm4643_vm8, %v4640_v11 }
 0x250 PF: > { %s13_s14 = sadd.s32 1, %s6153_s14   ;;  %s8395_s12 = smov %s6149_s13 }
 0x251   : > { %p10_p5 = scmp.ge.s32.totalorder %s13_s14, 4   ;;  %s8396_s13 = smov %s8398_s15 }
 0x253   :  { %12 = sbr.rel (!%p10_p5) target bundleno = 2 (0x2), region = 73 }

</bundles_post_ra>
